<compile_context>
chip_gen: v5e
topology: v5e:2x2
jax: 0.10.0
libtpu: 0.0.40
codegen_flags: <defaults>
</compile_context>

<pallas_src>
import functools

import jax
import jax.numpy as jnp
from jax import lax
from jax.experimental import pallas as pl
from jax.experimental.pallas import tpu as pltpu

# Operand dtype for the two N-scale matmuls (accumulation stays f32 via
# preferred_element_type).  Set to jnp.float32 for bit-closer agreement with
# the PyTorch module (~1e-6); bf16 is the performance default on v5e/v6e/v7x.
MATMUL_DTYPE = jnp.bfloat16


def _total_att_kernel(x_ref, wcat_ref, wpost_ref, bshift_ref, o_ref, *scratch,
                      c, n, n_pad, tile_m, num_m):
    single = (num_m == 1)
    if single:
        xbf_ref = acc_ref = None
    else:
        xbf_ref, acc_ref = scratch

    x = x_ref[0]                                      # (C, n_pad) f32, resident

    if single:
        x_mm = x.astype(MATMUL_DTYPE)
        x_m = x
    else:
        mi = pl.program_id(1)

        @pl.when(mi == 0)
        def _init():
            # Hoisted cast: X -> MATMUL_DTYPE once per batch, not once per tile.
            xbf_ref[...] = x.astype(MATMUL_DTYPE)
            acc_ref[...] = jnp.zeros_like(acc_ref)

        x_mm = xbf_ref[...]
        m0 = pl.multiple_of(mi * tile_m, tile_m)
        x_m = x_ref[0, :, pl.ds(m0, tile_m)]          # (C, tile_m) f32

    # Fused key-side projection: [Wqk ; Wv] @ X_m  (small, C-deep, f32).
    av = jnp.dot(wcat_ref[...], x_m, preferred_element_type=jnp.float32)
    a_m = av[:c, :].astype(MATMUL_DTYPE)              # (C, tm) = (Wq^T Wk) X_m
    v_m = av[c:, :].astype(MATMUL_DTYPE)              # (C, tm) = Wv X_m

    # energy_T[m, q] = sum_c A[c, m] * X[c, q]  -> (tile_m, n_pad).
    # Only the *small* (C, tile_m) lhs is in transposed orientation; the big
    # operands (X here, attn below) stay canonical -> no XLU transpose of an
    # N-sized tile per key step.
    energy = lax.dot_general(a_m, x_mm, (((0,), (0,)), ((), ())),
                             preferred_element_type=jnp.float32)

    if n_pad != n:
        # Padded query lanes must not contribute to the softmax denominator.
        q_ids = lax.broadcasted_iota(jnp.int32, (tile_m, n_pad), 1)
        energy = jnp.where(q_ids < n, energy, -1e30)

    # torch softmax(dim=1) == softmax over the query axis (lane axis here),
    # independently per key row m, followed by / (1e-9 + attn.sum(dim=1)).
    # Both divides fold into one EUP reciprocal: attn = e / (s * (1 + 1e-9)).
    mx = jnp.max(energy, axis=-1, keepdims=True)      # (tm, 1)
    e = jnp.exp(energy - mx)
    s = jnp.sum(e, axis=-1, keepdims=True)            # (tm, 1)
    scale = pl.reciprocal(s * (1.0 + 1e-9), approx=True)
    attn = (e * scale).astype(MATMUL_DTYPE)           # (tm, n_pad), cast early

    # partial[c, q] = sum_m V[c, m] * attn[m, q]   -- canonical MXU matmul.
    partial = jnp.dot(v_m, attn, preferred_element_type=jnp.float32)  # (C, n_pad)

    def _emit(att_out):
        # Folded linear_0 -> linear_1 -> conv2(1x1) -> BN(eval) + residual.
        out1 = jnp.dot(wpost_ref[...], att_out, preferred_element_type=jnp.float32)
        o_ref[0] = (out1 + bshift_ref[...] + x).astype(o_ref.dtype)

    if single:
        _emit(partial)
    else:
        acc_ref[...] += partial

        @pl.when(mi == num_m - 1)
        def _finalize():
            _emit(acc_ref[...])


_TILE_M_CANDIDATES = (1024, 768, 512, 384, 256, 128)


def _vmem_budget_bytes():
    """Per-generation VMEM budget, leaving headroom for Mosaic internals."""
    phys = 64 << 20                        # conservative floor (v7x: 64 MiB/TC)
    try:
        info = pltpu.get_tpu_info()
        for attr in ("vmem_capacity_bytes", "vmem_bytes", "vmem_size_bytes"):
            val = getattr(info, attr, None)
            if val is None:
                continue
            val = int(val)
            if val > 0:
                phys = val
                break
    except Exception:
        pass                               # off-device tracing: keep the floor
    # ~25% headroom for Mosaic internal scratch / double buffers; never request
    # more than 112 MiB even on 128 MiB parts (v5e/v6e -> ~96 MiB, v7x -> 48).
    return int(min(phys - (phys >> 2), 112 << 20))


def _estimate_vmem_bytes(c, n_pad, tile_m, num_m):
    est = 4 * c * n_pad * 4                 # x + out blocks, double-buffered f32
    est += 2 * (3 * c * c + c) * 4          # small weight blocks, double-buffered
    if num_m > 1:
        est += c * n_pad * 2                # bf16 X scratch
        est += c * n_pad * 4                # f32 (C, N) accumulator
    est += 3 * tile_m * n_pad * 4           # energy / exp / attn temporaries
    est += 4 * c * tile_m * 4               # projection outputs
    return est + (2 << 20)                  # slack for Mosaic internal scratch


def _pick_tile_m(c, n_pad, budget):
    for tm in _TILE_M_CANDIDATES:
        if tm > n_pad or n_pad % tm:
            continue
        if _estimate_vmem_bytes(c, n_pad, tm, n_pad // tm) <= budget:
            return tm
    return 128


def total_att_forward(x, params, *, tile_m=None):
    """x: (B, C, H, W) float32.  params: dict of deterministic weights."""
    b, c, h, w = x.shape
    n = h * w
    n_pad = -(-n // 128) * 128                       # lane-dense last dim
    x_cn = x.reshape(b, c, n)
    if n_pad != n:
        x_cn = jnp.pad(x_cn, ((0, 0), (0, 0), (0, n_pad - n)))

    # ---- trace-time weight folding --------------------------------------
    # energy = (Wq X)^T (Wk X) = X^T (Wq^T Wk) X
    wqk = params["wq"].T @ params["wk"]                              # (C, C)
    w_cat = jnp.concatenate([wqk, params["wv"]], axis=0)             # (2C, C)

    # SynchronizedBatchNorm2d folded as eval-mode per-channel affine, then the
    # whole post-attention linear chain folded into one matrix + one shift.
    eps = 1e-5
    bn_scale = params["bn_weight"] / jnp.sqrt(params["bn_running_var"] + eps)
    bn_shift = params["bn_bias"] - params["bn_running_mean"] * bn_scale
    w_post = params["wc2"] @ (params["w1"] @ params["w0"])           # (C, C)
    w_post = bn_scale[:, None] * w_post                              # fold BN scale
    bn_shift = bn_shift[:, None].astype(jnp.float32)                 # (C, 1)

    budget = _vmem_budget_bytes()
    if tile_m is None:
        tile_m = _pick_tile_m(c, n_pad, budget)
    assert n_pad % tile_m == 0, "tile_m must divide padded N"
    num_m = n_pad // tile_m

    scratch_shapes = []
    if num_m > 1:
        scratch_shapes = [pltpu.VMEM((c, n_pad), MATMUL_DTYPE),   # X, matmul dtype
                          pltpu.VMEM((c, n_pad), jnp.float32)]    # accumulator

    flops = b * (4 * c * n_pad * n_pad + 6 * c * c * n_pad)
    cost = pl.CostEstimate(flops=flops,
                           transcendentals=b * n_pad * n_pad,
                           bytes_accessed=b * 2 * c * n_pad * 4 + (3 * c * c + c) * 4)

    kernel = functools.partial(_total_att_kernel, c=c, n=n, n_pad=n_pad,
                               tile_m=tile_m, num_m=num_m)

    # TODO(synk): for B == 1 on v7x, split the key axis across both TensorCores
    # (per-core partial (C, N) accumulators + a tiny reduction pass) so the
    # second TC is not idle.
    out_cn = pl.pallas_call(
        kernel,
        out_shape=jax.ShapeDtypeStruct((b, c, n_pad), x.dtype),
        grid_spec=pltpu.PrefetchScalarGridSpec(
            num_scalar_prefetch=0,
            grid=(b, num_m),
            in_specs=[
                pl.BlockSpec((1, c, n_pad), lambda bi, mi: (bi, 0, 0)),  # x
                pl.BlockSpec((2 * c, c), lambda bi, mi: (0, 0)),         # [Wqk ; Wv]
                pl.BlockSpec((c, c), lambda bi, mi: (0, 0)),             # folded post
                pl.BlockSpec((c, 1), lambda bi, mi: (0, 0)),             # BN shift
            ],
            out_specs=pl.BlockSpec((1, c, n_pad), lambda bi, mi: (bi, 0, 0)),
            scratch_shapes=scratch_shapes,
        ),
        compiler_params=pltpu.CompilerParams(
            # Batch axis shards across TensorCores; the m axis carries the
            # accumulator / resident output so it must stay "arbitrary".
            dimension_semantics=("parallel", "arbitrary"),
            vmem_limit_bytes=budget),
        cost_estimate=cost,
    )(x_cn, w_cat, w_post, bn_shift)

    if n_pad != n:
        out_cn = out_cn[:, :, :n]
    return out_cn.reshape(b, c, h, w)


def reference_forward(x, params):
    """Pure-JAX replica of the PyTorch forward for verification."""
    b, c, h, w = x.shape
    n = h * w
    eps = 1e-5
    xf = x.reshape(b, c, n)
    query = jnp.einsum("oc,bcn->bno", params["wq"], xf)     # (B, N, C)
    key = jnp.einsum("oc,bcn->bon", params["wk"], xf)       # (B, C, N)
    value = jnp.einsum("oc,bcn->bon", params["wv"], xf)     # (B, C, N)
    energy = jnp.einsum("bno,bom->bnm", query, key)         # (B, N, N)
    attn = jax.nn.softmax(energy, axis=1)
    attn = attn / (1e-9 + jnp.sum(attn, axis=1, keepdims=True))
    out = jnp.einsum("bnm,bmc->bnc", attn, jnp.transpose(value, (0, 2, 1)))
    out = jnp.einsum("oc,bcn->bon", params["w0"], jnp.transpose(out, (0, 2, 1)))
    out = jnp.einsum("oc,bcn->bon", params["w1"], out)      # (B, C, N)
    out1 = out.reshape(b, c, h, w)
    out1 = jnp.einsum("oc,bchw->bohw", params["wc2"], out1)
    scale = params["bn_weight"] / jnp.sqrt(params["bn_running_var"] + eps)
    shift = params["bn_bias"] - params["bn_running_mean"] * scale
    out1 = out1 * scale[None, :, None, None] + shift[None, :, None, None]
    return out1 + x


def make_params(key, channel):
    ks = jax.random.split(key, 8)
    p = {
        "wq":  0.1 * jax.random.normal(ks[0], (channel, channel), jnp.float32),
        "wk":  0.1 * jax.random.normal(ks[1], (channel, channel), jnp.float32),
        "wv":  0.1 * jax.random.normal(ks[2], (channel, channel), jnp.float32),
        "w0":  0.1 * jax.random.normal(ks[3], (64, channel), jnp.float32),
        "w1":  0.1 * jax.random.normal(ks[4], (channel, 64), jnp.float32),
        "wc2": 0.1 * jax.random.normal(ks[5], (channel, channel), jnp.float32),
        # eval-mode SynchronizedBatchNorm2d params / running stats
        "bn_weight": 1.0 + 0.05 * jax.random.normal(ks[6], (channel,), jnp.float32),
        "bn_bias":   0.05 * jax.random.normal(ks[7], (channel,), jnp.float32),
        "bn_running_mean": jnp.zeros((channel,), jnp.float32),
        "bn_running_var":  jnp.ones((channel,), jnp.float32),
    }
    # NOTE: `conv_mask` and `gamma` exist in __init__ but are unused in forward.
    # TODO(synk): SynchronizedBatchNorm2d is modelled in inference mode (affine
    # with running stats); training-mode cross-replica batch stats are not
    # reproduced.
    return p


def _check(x, params, **kw):
    out = jax.block_until_ready(total_att_forward(x, params, **kw))
    ref = reference_forward(x, params)
    assert out.shape == x.shape
    assert jnp.allclose(out, ref, atol=1e-2, rtol=1e-2), (
        "mismatch vs reference, max |err| = %s" % jnp.max(jnp.abs(out - ref)))
    return out


if __name__ == "__main__":
    key = jax.random.PRNGKey(0)
    kx1, kx2, kp = jax.random.split(key, 3)
    C = 8
    params = make_params(kp, C)

    # 1) Single key-tile fast path (N = 256, no padding, no accumulator).
    x1 = jax.random.normal(kx1, (2, C, 16, 16), jnp.float32)
    _check(x1, params)

    # 2) Multi key-tile accumulator path (forced tile_m = 128 -> num_m = 2).
    _check(x1, params, tile_m=128)

    # 3) Padded-N path (H*W = 169 -> padded to 256) + accumulator path.
    x2 = jax.random.normal(kx2, (1, C, 13, 13), jnp.float32)
    _check(x2, params, tile_m=128)

    print("KERNEL_OK")
</pallas_src>

<mosaic_0001>
module attributes {stable_mosaic.version = 11 : i64} {
  func.func @_total_att_kernel(%arg0: i32, %arg1: i32, %arg2: memref<1x8x256xf32, #tpu.memory_space<vmem>>, %arg3: memref<16x8xf32, #tpu.memory_space<vmem>>, %arg4: memref<8x8xf32, #tpu.memory_space<vmem>>, %arg5: memref<8x1xf32, #tpu.memory_space<vmem>>, %arg6: memref<1x8x256xf32, #tpu.memory_space<vmem>>) attributes {dimension_semantics = [#tpu.dimension_semantics<parallel>, #tpu.dimension_semantics<arbitrary>], iteration_bounds = array<i64: 2, 1>, scalar_prefetch = 0 : i64, scratch_operands = 0 : i64, tpu.core_type = #tpu.core_type<tc>, window_params = [{transform_indices = @transform_0, window_bounds = array<i64: 1, 8, 256>}, {pipeline_mode = #tpu.pipeline_mode<synchronous>, transform_indices = @transform_1, window_bounds = array<i64: 16, 8>}, {pipeline_mode = #tpu.pipeline_mode<synchronous>, transform_indices = @transform_2, window_bounds = array<i64: 8, 8>}, {pipeline_mode = #tpu.pipeline_mode<synchronous>, transform_indices = @transform_3, window_bounds = array<i64: 8, 1>}, {transform_indices = @transform_4, window_bounds = array<i64: 1, 8, 256>}]} {
    %c0 = arith.constant 0 : index
    %c0_0 = arith.constant 0 : index
    %c0_1 = arith.constant 0 : index
    %0 = vector.load %arg2[%c0, %c0_0, %c0_1] : memref<1x8x256xf32, #tpu.memory_space<vmem>>, vector<1x8x256xf32>
    %1 = vector.shape_cast %0 : vector<1x8x256xf32> to vector<8x256xf32>
    %2 = arith.truncf %1 : vector<8x256xf32> to vector<8x256xbf16>
    %c0_2 = arith.constant 0 : index
    %c0_3 = arith.constant 0 : index
    %3 = vector.load %arg3[%c0_2, %c0_3] : memref<16x8xf32, #tpu.memory_space<vmem>>, vector<16x8xf32>
    %cst = arith.constant dense<0.000000e+00> : vector<16x256xf32>
    %4 = tpu.matmul %3, %1, %cst {dimension_numbers = #tpu.dot_dimension_numbers<[1], [0], [0], [1], [0, 0, 1, 1], [], []>} : vector<16x8xf32>, vector<8x256xf32>, vector<16x256xf32> -> vector<16x256xf32>
    %5 = vector.extract_strided_slice %4 {offsets = [0, 0], sizes = [8, 256], strides = [1, 1]} : vector<16x256xf32> to vector<8x256xf32>
    %6 = arith.truncf %5 : vector<8x256xf32> to vector<8x256xbf16>
    %7 = vector.extract_strided_slice %4 {offsets = [8, 0], sizes = [8, 256], strides = [1, 1]} : vector<16x256xf32> to vector<8x256xf32>
    %8 = arith.truncf %7 : vector<8x256xf32> to vector<8x256xbf16>
    %cst_4 = arith.constant dense<0.000000e+00> : vector<256x256xf32>
    %9 = tpu.matmul %6, %2, %cst_4 {dimension_numbers = #tpu.dot_dimension_numbers<[0], [0], [1], [1], [0, 1, 1, 1], [], []>} : vector<8x256xbf16>, vector<8x256xbf16>, vector<256x256xf32> -> vector<256x256xf32>
    %cst_5 = arith.constant dense<0xFF800000> : vector<256xf32>
    %10 = vector.multi_reduction <maximumf>, %9, %cst_5 [1] : vector<256x256xf32> to vector<256xf32>
    %11 = vector.shape_cast %10 : vector<256xf32> to vector<256x1xf32>
    %12 = vector.broadcast %11 : vector<256x1xf32> to vector<256x256xf32>
    %13 = arith.subf %9, %12 : vector<256x256xf32>
    %14 = math.exp %13 : vector<256x256xf32>
    %cst_6 = arith.constant dense<0.000000e+00> : vector<256xf32>
    %15 = vector.multi_reduction <add>, %14, %cst_6 [1] : vector<256x256xf32> to vector<256xf32>
    %16 = vector.shape_cast %15 : vector<256xf32> to vector<256x1xf32>
    %cst_7 = arith.constant 1.000000e+00 : f32
    %17 = vector.broadcast %cst_7 : f32 to vector<256x1xf32>
    %18 = arith.mulf %16, %17 : vector<256x1xf32>
    %19 = tpu.reciprocal %18 {approx = true} : vector<256x1xf32> -> vector<256x1xf32>
    %20 = vector.broadcast %19 : vector<256x1xf32> to vector<256x256xf32>
    %21 = arith.mulf %14, %20 : vector<256x256xf32>
    %22 = arith.truncf %21 : vector<256x256xf32> to vector<256x256xbf16>
    %cst_8 = arith.constant dense<0.000000e+00> : vector<8x256xf32>
    %23 = tpu.matmul %8, %22, %cst_8 {dimension_numbers = #tpu.dot_dimension_numbers<[1], [0], [0], [1], [0, 0, 1, 1], [], []>} : vector<8x256xbf16>, vector<256x256xbf16>, vector<8x256xf32> -> vector<8x256xf32>
    %c0_9 = arith.constant 0 : index
    %c0_10 = arith.constant 0 : index
    %24 = vector.load %arg4[%c0_9, %c0_10] : memref<8x8xf32, #tpu.memory_space<vmem>>, vector<8x8xf32>
    %cst_11 = arith.constant dense<0.000000e+00> : vector<8x256xf32>
    %25 = tpu.matmul %24, %23, %cst_11 {dimension_numbers = #tpu.dot_dimension_numbers<[1], [0], [0], [1], [0, 0, 1, 1], [], []>} : vector<8x8xf32>, vector<8x256xf32>, vector<8x256xf32> -> vector<8x256xf32>
    %c0_12 = arith.constant 0 : index
    %c0_13 = arith.constant 0 : index
    %26 = vector.load %arg5[%c0_12, %c0_13] : memref<8x1xf32, #tpu.memory_space<vmem>>, vector<8x1xf32>
    %27 = vector.broadcast %26 : vector<8x1xf32> to vector<8x256xf32>
    %28 = arith.addf %25, %27 : vector<8x256xf32>
    %29 = arith.addf %28, %1 : vector<8x256xf32>
    %c0_14 = arith.constant 0 : index
    %c0_15 = arith.constant 0 : index
    %c0_16 = arith.constant 0 : index
    %30 = vector.load %arg6[%c0_14, %c0_15, %c0_16] : memref<1x8x256xf32, #tpu.memory_space<vmem>>, vector<1x8x256xf32>
    %31 = vector.shape_cast %30 : vector<1x8x256xf32> to vector<8x256xf32>
    %32 = vector.shape_cast %29 : vector<8x256xf32> to vector<1x8x256xf32>
    tpu.vector_store %arg6[%c0_14, %c0_15, %c0_16], %32 {strides = array<i32>} : memref<1x8x256xf32, #tpu.memory_space<vmem>>, vector<1x8x256xf32>,
    return
  }
  func.func @transform_0(%arg0: i32, %arg1: i32) -> (i32, i32, i32) {
    %c0_i32 = arith.constant 0 : i32
    %c0_i32_0 = arith.constant 0 : i32
    %c0_i32_1 = arith.constant 0 : i32
    return %arg0, %c0_i32, %c0_i32_0 : i32, i32, i32
  }
  func.func @transform_1(%arg0: i32, %arg1: i32) -> (i32, i32) {
    %c0_i32 = arith.constant 0 : i32
    %c0_i32_0 = arith.constant 0 : i32
    %c0_i32_1 = arith.constant 0 : i32
    return %c0_i32, %c0_i32_0 : i32, i32
  }
  func.func @transform_2(%arg0: i32, %arg1: i32) -> (i32, i32) {
    %c0_i32 = arith.constant 0 : i32
    %c0_i32_0 = arith.constant 0 : i32
    %c0_i32_1 = arith.constant 0 : i32
    return %c0_i32, %c0_i32_0 : i32, i32
  }
  func.func @transform_3(%arg0: i32, %arg1: i32) -> (i32, i32) {
    %c0_i32 = arith.constant 0 : i32
    %c0_i32_0 = arith.constant 0 : i32
    %c0_i32_1 = arith.constant 0 : i32
    return %c0_i32, %c0_i32_0 : i32, i32
  }
  func.func @transform_4(%arg0: i32, %arg1: i32) -> (i32, i32, i32) {
    %c0_i32 = arith.constant 0 : i32
    %c0_i32_0 = arith.constant 0 : i32
    %c0_i32_1 = arith.constant 0 : i32
    return %arg0, %c0_i32, %c0_i32_0 : i32, i32, i32
  }
}

</mosaic_0001>

<bundles_post_ra>
// kernel: tpu_custom_call.1
= control target key start
LH: loop header
LB: loop body
LE: loop exit
PB: predicated region body
PF: predicated region fallthrough
CT: control target
= control target key end

     0   :  { %9 = vsyncpa [#allocation3], 0  ;;  %s2630_s0 = inlined_call_operand.hbm [shape: f32[2,8,256], index: 0, kind: input, shape index: {}]   ;;  %s2631_s1 = inlined_call_operand.vmem [shape: f32[16,8], index: 1, kind: input, shape index: {}]   ;;  %s2632_s2 = inlined_call_operand.vmem [shape: f32[8,8], index: 2, kind: input, shape index: {}]   ;;  %s2633_s3 = inlined_call_operand.vmem [shape: f32[8,1], index: 3, kind: input, shape index: {}]   ;;  %s2634_s4 = inlined_call_operand.hbm [shape: f32[2,8,256], index: 4, kind: output, shape index: {}]  }
   0x1   :  { %11 = vsyncpa [#allocation3 + $0x1], 0 }
   0x2   :  { %12 = vsyncpa [#allocation4], 0 }
   0x3   :  { %14 = vsyncpa [#allocation4 + $0x1], 0  ;;  %s1714_s15 = smov 0   ;;  %s1716_s16 = smov 0  }
   0x4   :  { %s1718_s17 = smov 0   ;;  %s1720_s18 = smov 0  }
   0x5   :  { %s1722_s19 = smov 0   ;;  %s1724_s20 = smov 0  }
   0x6 LB: > { %s1259_s21 = sadd.s32 4294967295, %s1686_s20   ;;  %s1260_s22 = sadd.s32 4294967294, %s1686_s20   ;;  %s1686_s20 = sphi %s1724_s20, %s20_s20   ;;  %s1682_s19 = sphi %s1722_s19, %s2727_s19   ;;  %s1678_s18 = sphi %s1720_s18, %s2726_s18   ;;  %s1674_s17 = sphi %s1718_s17, %s2725_s17   ;;  %s1670_s16 = sphi %s1716_s16, %s2724_s16   ;;  %s1666_s15 = sphi %s1714_s15, %s2723_s15  }
   0x7   : > { %s32_s23 = sadd.s32 1, %s1682_s19  ;;  %s39_s24 = sadd.s32 1, %s1674_s17 }
   0x8   : > { %p34_p0 = scmp.ge.s32.totalorder %s32_s23, 2  ;;  %p46_p1 = scmp.ne.s32.totalorder %s1674_s17, %s1670_s16 }
   0x9   : > { %p47_p2 = scmp.eq.s32.totalorder %s1686_s20, 0  ;;  %p52_p3 = scmp.ne.s32.totalorder %s1670_s16, %s1666_s15 }
   0xa   : > { %s2729_s23 = smov (%p34_p0, %s32_s23), 0  ;;  %p53_p5 = scmp.eq.s32.totalorder %s1259_s21, 0 }
   0xb   : > { %p1755_p4 = por %p47_p2, %p46_p1  ;;  %s36_s26 = ssub.s32 %s1682_s19, %s2729_s23 }
   0xc   : > { %p139_p6 = scmp.eq.s32.totalorder %s1259_s21, 1  ;;  %p37_p7 = scmp.eq.s32.totalorder %s36_s26, 0 }
   0xd   : > { %p1761_p8 = por %p53_p5, %p52_p3  ;;  %p145_p10 = scmp.eq.s32.totalorder %s1260_s22, 1 }
   0xe   : > { %p1765_p9 = por %p139_p6, %p46_p1  ;;  %p1262_p12 = scmp.ge.s32.totalorder %s1686_s20, 2 }
   0xf   : > { %s1770_s29 = scalar_select %p37_p7, %s1674_s17, %s39_s24  }
  0x10   : > { %p1772_p11 = por %p145_p10, %p52_p3  ;;  %p1328_p13 = scmp.lt.s32.totalorder %s1686_s20, 2 }
  0x11   : > { %s174_s5 = sand.u32 1, %s1674_s17   ;;  %s1312_s7 = sshll.u32 %s1682_s19, 4 }
  0x12   : > { %s1263_s6 = sshll.u32 %s174_s5, 4  ;;  %s183_s10 = scalar_lea.hbm %s2630_s0, %s1312_s7 }
  0x13   : > { %s178_s11 = scalar_lea.vmem [#allocation2], %s1263_s6  ;;  %s185_s13 = sshll.u32 %s183_s10, 4  ;;  %s186_s13 = int_to_ptr.hbm [resolvable:$true] %s185_s13 }
  0x14   : > { %s187_s12 = sshll.u32 %s178_s11, 4  ;;  %p1321_p0 = pnand %p1328_p13, %p1755_p4  ;;  %s188_s12 = int_to_ptr.vmem [resolvable:$true] %s187_s12 }
  0x15   : > { %p1266_p1 = scmp.ge.s32.totalorder %s1686_s20, 1  ;;  %p192_p2 = scmp.lt.s32.totalorder %s1686_s20, 3 }
  0x16   : > { %s175_s14 = scalar_lea.sflag [#allocation3], %s174_s5 }
  0x17   : > { %1323 = dma.hbm_to_vmem [thread:$0]  (!%p1321_p0), %s186_s13, 256, %s188_s12, %s175_s14  }
  0x18   : > { %p193_p3 = pnand %p1266_p1, %p192_p2 }
  0x1a   : > { %196 = sbr.rel (%p193_p3) target bundleno = 1383 (0x567), region = 36 }
  0x1f   : > { %s1788_s21 = sand.u32 1, %s1670_s16  }
  0x20   : > { %s1267_s22 = sshll.u32 %s1788_s21, 4  ;;  %s199_s24 = scalar_lea.sflag [#allocation3], %s1788_s21 }
  0x21   : > { %s1794_s26 = scalar_lea.vmem [#allocation2], %s1267_s22 }
  0x22   : > { %1657 = dma.done.wait (%p1761_p8), %s199_s24, 256  }
  0x23   : > { %1659 = vsyncadd (%p1761_p8), %s199_s24, 4294967040  ;;  %vm235_vm0 = vcmask 64512   ;;  %v229_v0 = vld [vmem:[%s1794_s26] sm:$0xff]  ;;  %v230_v1 = vld [vmem:[%s1794_s26 + $0x8] sm:$0xff]  ;;  %vm364_vm1 = vcmask 1043456   ;;  %s227_s11 = scalar_lea.vmem [#allocation5], %s1267_s22 }
  0x24   : > { %v233_v2 = vld [vmem:[%s2631_s1] sm:$0xff]  ;;  %257 = vmatpush.msra.mxu0 %v229_v0  ;;  %280 = vmatpush.msra.mxu1 %v230_v1  ;;  %v234_v3 = vld [vmem:[%s2631_s1 + $0x8] sm:$0xff]  ;;  %v231_v4 = vpack.c.bf16 %v229_v0, %v229_v0  ;;  %v232_v5 = vpack.c.bf16 %v230_v1, %v230_v1  ;;  %s1313_s12 = sshll.u32 %s1678_s18, 4  ;;  %s1181_s25 = sshll.u32 %s227_s11, 4  ;;  %s1182_s25 = int_to_ptr.vmem [resolvable:$true] %s1181_s25 }
  0x25   : > { %1269 = vmatmul.msk.f32.vlgmr.msra.gmra.mxu0 %vm235_vm0, %v233_v2  ;;  %1271 = vmatmul.msk.f32.vlgmr.msra.gmra.mxu1 %vm235_vm0, %v233_v2  ;;  %s1179_s24 = scalar_lea.hbm %s2634_s4, %s1313_s12  ;;  %s1168_s6 = scalar_lea.sflag [#allocation4], %s1788_s21 }
  0x26   : > { %v366_v6 = vsel %vm364_vm1, %v231_v4, 0  ;;  %v369_v7 = vsel %vm364_vm1, %v232_v5, 0  ;;  %s1183_s5 = sshll.u32 %s1179_s24, 4  ;;  %s1624_s8 = scalar_lea.hbm %s2634_s4, 32  ;;  %s1184_s5 = int_to_ptr.hbm [resolvable:$true] %s1183_s5 }
  0x27   : > { %378 = vmatpush.bf16.msrb.mxu0 %v366_v6  ;;  %467 = vmatpush.bf16.msrb.mxu1 %v369_v7  ;;  %s1618_s7 = sshra.s32 %s1184_s5, 4  ;;  %s1619_s7 = int_to_ptr.hbm [resolvable:$true] %s1618_s7 }
  0x28   : > { %1314 = vmatpush.bf16.msra.mxu2 %v366_v6  ;;  %1315 = vmatpush.bf16.msra.mxu3 %v369_v7  ;;  %s1620_s22 = scalar_lea.hbm %s1619_s7, 16  ;;  %p1625_p7 = scmp.lt.s32.totalorder %s1619_s7, %s2634_s4 }
  0x29   : > { %p1621_p4 = scmp.ne.s32.totalorder %s1619_s7, %s1620_s22  ;;  %p1626_p8 = scmp.lt.s32.totalorder %s1624_s8, %s1620_s22 }
  0x2b   : > { %p1622_p5 = pnand %p1621_p4, %p1765_p9  ;;  %p1627_p10 = por %p1626_p8, %p1625_p7 }
  0x2d   : > { %1270 = vmatmul.msk.f32.gmra.mxu0 %vm235_vm0, %v234_v3  ;;  %1272 = vmatmul.msk.f32.gmra.mxu1 %vm235_vm0, %v234_v3  ;;  %p1623_p6 = pneg %p1622_p5 }
  0x2f   : > { %p1628_p13 = pnand %p1627_p10, %p1623_p6 }
  0xa2   : > { %v259_v8 = vpop.f32.mrf.mxu0  ;;  %v282_v9 = vpop.f32.mrf.mxu1 }
  0xa3   : > { %v288_v10 = vpack.c.bf16 %v259_v8, %v259_v8  ;;  %v289_v11 = vpack.c.bf16 %v282_v9, %v282_v9 }
  0xa5   : > { %292 = vxpose.binary.xlu0.c.b16.start.end [1/2] (short) %v289_v11, %v288_v10, 128 }
  0xaa   : > { %v1832_v27 = vpop.f32.mrf.mxu0  ;;  %v1834_v28 = vpop.f32.mrf.mxu1 }
  0xab   : > { %2663 = vst [vmem:[#allocation8_spill] sm:$0xff] %v1832_v27 }
  0xac   : > { %2664 = vst [vmem:[#allocation9_spill] sm:$0xff] %v1834_v28 }
 0x151   : > { %v300_v12 = vpop.trf.xlu0 }
 0x152   : > { %1273 = vmatmul.msk.bf16.vlgmr.msrb.gmra.mxu0 %vm235_vm0, %v300_v12  ;;  %1289 = vmatmul.msk.bf16.vlgmr.msrb.gmra.mxu1 %vm235_vm0, %v300_v12 }
 0x159   : > { %v301_v13 = vpop.trf.xlu0 }
 0x161   : > { %v302_v14 = vpop.trf.xlu0 }
 0x162   : > { %1274 = vmatmul.msk.bf16.gmra.mxu0 %vm235_vm0, %v302_v14  ;;  %1290 = vmatmul.msk.bf16.gmra.mxu1 %vm235_vm0, %v302_v14 }
 0x169   : > { %v303_v15 = vpop.trf.xlu0 }
 0x171   : > { %v304_v16 = vpop.trf.xlu0 }
 0x172   : > { %1275 = vmatmul.msk.bf16.gmra.mxu0 %vm235_vm0, %v304_v16  ;;  %1291 = vmatmul.msk.bf16.gmra.mxu1 %vm235_vm0, %v304_v16 }
 0x179   : > { %v305_v17 = vpop.trf.xlu0 }
 0x181   : > { %v306_v18 = vpop.trf.xlu0 }
 0x182   : > { %1276 = vmatmul.msk.bf16.gmra.mxu0 %vm235_vm0, %v306_v18  ;;  %1292 = vmatmul.msk.bf16.gmra.mxu1 %vm235_vm0, %v306_v18 }
 0x189   : > { %v307_v19 = vpop.trf.xlu0 }
 0x191   : > { %v308_v20 = vpop.trf.xlu0 }
 0x192   : > { %1277 = vmatmul.msk.bf16.gmra.mxu0 %vm235_vm0, %v308_v20  ;;  %1293 = vmatmul.msk.bf16.gmra.mxu1 %vm235_vm0, %v308_v20 }
 0x199   : > { %v309_v21 = vpop.trf.xlu0 }
 0x1a1   : > { %v310_v22 = vpop.trf.xlu0 }
 0x1a2   : > { %1278 = vmatmul.msk.bf16.vlgmr.msra.gmra.mxu2 %vm235_vm0, %v310_v22  ;;  %1294 = vmatmul.msk.bf16.vlgmr.msra.gmra.mxu3 %vm235_vm0, %v310_v22 }
 0x1a9   : > { %v311_v23 = vpop.trf.xlu0 }
 0x1b1   : > { %v312_v24 = vpop.trf.xlu0 }
 0x1b2   : > { %1279 = vmatmul.msk.bf16.gmra.mxu2 %vm235_vm0, %v312_v24  ;;  %1295 = vmatmul.msk.bf16.gmra.mxu3 %vm235_vm0, %v312_v24 }
 0x1b9   : > { %v313_v25 = vpop.trf.xlu0 }
 0x1c1   : > { %v314_v26 = vpop.trf.xlu0 }
 0x1c2   : > { %1280 = vmatmul.msk.bf16.gmra.mxu2 %vm235_vm0, %v314_v26  ;;  %1296 = vmatmul.msk.bf16.gmra.mxu3 %vm235_vm0, %v314_v26 }
 0x1cf   : > { %v1836_v29 = vpop.f32.mrf.mxu0  ;;  %v1838_v30 = vpop.f32.mrf.mxu1 }
 0x1d0   : > { %2665 = vst [vmem:[#allocation10_spill] sm:$0xff] %v1836_v29 }
 0x1d1   : > { %2666 = vst [vmem:[#allocation11_spill] sm:$0xff] %v1838_v30 }
 0x1d2   : > { %1281 = vmatmul.msk.bf16.gmra.mxu2 %vm235_vm0, %v301_v13  ;;  %1297 = vmatmul.msk.bf16.gmra.mxu3 %vm235_vm0, %v301_v13  ;;  %v315_v13 = vpop.trf.xlu0 }
 0x1d7   : > { %v1842_v31 = vpop.f32.mrf.mxu0  ;;  %v1844_v32 = vpop.f32.mrf.mxu1 }
 0x1d8   : > { %v552_v18 = vmax.f32 %v1842_v31, %v1844_v32 }
 0x1df   : > { %v1848_v33 = vpop.f32.mrf.mxu0  ;;  %v1850_v34 = vpop.f32.mrf.mxu1 }
 0x1e0   : > { %v555_v12 = vmax.f32 %v1848_v33, %v1850_v34 }
 0x1e2   : > { %1282 = vmatmul.msk.bf16.gmra.mxu2 %vm235_vm0, %v303_v15  ;;  %1298 = vmatmul.msk.bf16.gmra.mxu3 %vm235_vm0, %v303_v15  ;;  %v549_v15 = vmax.f32 %v1836_v29, %v1838_v30 }
 0x1e7   : > { %v1852_v35 = vpop.f32.mrf.mxu0  ;;  %v1854_v36 = vpop.f32.mrf.mxu1 }
 0x1e8   : > { %v558_v14 = vmax.f32 %v1852_v35, %v1854_v36 }
 0x1ef   : > { %v1858_v37 = vpop.f32.mrf.mxu0  ;;  %v1860_v38 = vpop.f32.mrf.mxu1 }
 0x1f0   : > { %v561_v8 = vmax.f32 %v1858_v37, %v1860_v38 }
 0x1f2   : > { %1283 = vmatmul.msk.bf16.gmra.mxu2 %vm235_vm0, %v305_v17  ;;  %1299 = vmatmul.msk.bf16.gmra.mxu3 %vm235_vm0, %v305_v17 }
 0x1f7   : > { %v1862_v39 = vpop.f32.mrf.mxu0  ;;  %v1864_v40 = vpop.f32.mrf.mxu1 }
 0x1f8   : > { %v564_v11 = vmax.f32 %v1862_v39, %v1864_v40 }
 0x1ff   : > { %v1872_v43 = vpop.f32.mrf.mxu0  ;;  %v1874_v44 = vpop.f32.mrf.mxu1 }
 0x200   : > { %v567_v4 = vmax.f32 %v1872_v43, %v1874_v44 }
 0x202   : > { %1284 = vmatmul.msk.bf16.gmra.mxu2 %vm235_vm0, %v307_v19  ;;  %1300 = vmatmul.msk.bf16.gmra.mxu3 %vm235_vm0, %v307_v19 }
 0x207   : > { %v1888_v50 = vpop.f32.mrf.mxu0  ;;  %v1890_v51 = vpop.f32.mrf.mxu1 }
 0x208   : > { %v570_v7 = vmax.f32 %v1888_v50, %v1890_v51 }
 0x20f   : > { %v1900_v56 = vpop.f32.mrf.mxu0  ;;  %v1902_v57 = vpop.f32.mrf.mxu1 }
 0x210   : > { %v573_v62 = vmax.f32 %v1900_v56, %v1902_v57 }
 0x212   : > { %1285 = vmatmul.msk.bf16.gmra.mxu2 %vm235_vm0, %v309_v21  ;;  %1301 = vmatmul.msk.bf16.gmra.mxu3 %vm235_vm0, %v309_v21 }
 0x217   : > { %v1914_v63 = vpop.f32.mrf.mxu0  ;;  %v1916_v0 = vpop.f32.mrf.mxu1 }
 0x218   : > { %v576_v3 = vmax.f32 %v1914_v63, %v1916_v0 }
 0x222   : > { %1286 = vmatmul.msk.bf16.gmra.mxu2 %vm235_vm0, %v311_v23  ;;  %1302 = vmatmul.msk.bf16.gmra.mxu3 %vm235_vm0, %v311_v23 }
 0x225   : > { %v1868_v41 = vpop.f32.mrf.mxu2  ;;  %v1870_v42 = vpop.f32.mrf.mxu3 }
 0x226   : > { %v579_v54 = vmax.f32 %v1868_v41, %v1870_v42 }
 0x22d   : > { %v1876_v45 = vpop.f32.mrf.mxu2  ;;  %v1878_v46 = vpop.f32.mrf.mxu3 }
 0x22e   : > { %v582_v60 = vmax.f32 %v1876_v45, %v1878_v46 }
 0x232   : > { %1287 = vmatmul.msk.bf16.gmra.mxu2 %vm235_vm0, %v313_v25  ;;  %1303 = vmatmul.msk.bf16.gmra.mxu3 %vm235_vm0, %v313_v25 }
 0x235   : > { %v1882_v47 = vpop.f32.mrf.mxu2  ;;  %v1884_v48 = vpop.f32.mrf.mxu3 }
 0x236   : > { %v585_v49 = vmax.f32 %v1882_v47, %v1884_v48 }
 0x238   : > { %586 = vmax.xlane.f32.xlu2 %v585_v49 }
 0x23d   : > { %v1892_v52 = vpop.f32.mrf.mxu2  ;;  %v1894_v53 = vpop.f32.mrf.mxu3 }
 0x23e   : > { %v588_v55 = vmax.f32 %v1892_v52, %v1894_v53 }
 0x240   : > { %580 = vmax.xlane.f32.xlu2 %v579_v54  ;;  %589 = vmax.xlane.f32.xlu1 %v588_v55 }
 0x242   : > { %1288 = vmatmul.msk.bf16.gmra.mxu2 %vm235_vm0, %v315_v13  ;;  %1304 = vmatmul.msk.bf16.gmra.mxu3 %vm235_vm0, %v315_v13 }
 0x245   : > { %v1904_v58 = vpop.f32.mrf.mxu2  ;;  %v1906_v59 = vpop.f32.mrf.mxu3 }
 0x246   : > { %v591_v61 = vmax.f32 %v1904_v58, %v1906_v59 }
 0x248   : > { %583 = vmax.xlane.f32.xlu1 %v582_v60  ;;  %592 = vmax.xlane.f32.xlu0 %v591_v61 }
 0x249   : > { %574 = vmax.xlane.f32.xlu2 %v573_v62 }
 0x24d   : > { %v1918_v1 = vpop.f32.mrf.mxu2  ;;  %v1920_v2 = vpop.f32.mrf.mxu3 }
 0x24e   : > { %v594_v22 = vmax.f32 %v1918_v1, %v1920_v2 }
 0x250   : > { %577 = vmax.xlane.f32.xlu1 %v576_v3 }
 0x251   : > { %568 = vmax.xlane.f32.xlu2 %v567_v4 }
 0x255   : > { %v1926_v5 = vpop.f32.mrf.mxu2  ;;  %v1928_v6 = vpop.f32.mrf.mxu3 }
 0x256   : > { %2667 = vst [vmem:[#allocation12_spill] sm:$0xff] %v1926_v5  ;;  %v597_v19 = vmax.f32 %v1926_v5, %v1928_v6 }
 0x257   : > { %2668 = vst [vmem:[#allocation13_spill] sm:$0xff] %v1928_v6 }
 0x258   : > { %571 = vmax.xlane.f32.xlu1 %v570_v7 }
 0x259   : > { %562 = vmax.xlane.f32.xlu2 %v561_v8 }
 0x25d   : > { %v1934_v9 = vpop.f32.mrf.mxu2  ;;  %v1936_v10 = vpop.f32.mrf.mxu3 }
 0x25e   : > { %2669 = vst [vmem:[#allocation14_spill] sm:$0xff] %v1934_v9  ;;  %v600_v26 = vmax.f32 %v1934_v9, %v1936_v10 }
 0x25f   : > { %2670 = vst [vmem:[#allocation15_spill] sm:$0xff] %v1936_v10 }
 0x260   : > { %565 = vmax.xlane.f32.xlu1 %v564_v11 }
 0x261   : > { %556 = vmax.xlane.f32.xlu2 %v555_v12 }
 0x265   : > { %v1948_v16 = vpop.f32.mrf.mxu2  ;;  %v1950_v17 = vpop.f32.mrf.mxu3 }
 0x266   : > { %v603_v23 = vmax.f32 %v1948_v16, %v1950_v17 }
 0x268   : > { %559 = vmax.xlane.f32.xlu1 %v558_v14 }
 0x269   : > { %550 = vmax.xlane.f32.xlu2 %v549_v15 }
 0x26d   : > { %v1956_v20 = vpop.f32.mrf.mxu2  ;;  %v1958_v21 = vpop.f32.mrf.mxu3 }
 0x26e   : > { %2671 = vst [vmem:[#allocation16_spill] sm:$0xff] %v1956_v20  ;;  %v606_v54 = vmax.f32 %v1956_v20, %v1958_v21 }
 0x26f   : > { %2672 = vst [vmem:[#allocation17_spill] sm:$0xff] %v1958_v21 }
 0x270   : > { %553 = vmax.xlane.f32.xlu1 %v552_v18 }
 0x271   : > { %598 = vmax.xlane.f32.xlu2 %v597_v19 }
 0x275   : > { %v1964_v24 = vpop.f32.mrf.mxu2  ;;  %v1966_v25 = vpop.f32.mrf.mxu3 }
 0x276   : > { %v609_v49 = vmax.f32 %v1964_v24, %v1966_v25 }
 0x278   : > { %595 = vmax.xlane.f32.xlu1 %v594_v22 }
 0x279   : > { %604 = vmax.xlane.f32.xlu2 %v603_v23 }
 0x27d   : > { %v1974_v55 = vpop.f32.mrf.mxu2  ;;  %v1976_v60 = vpop.f32.mrf.mxu3 }
 0x27e   : > { %v612_v61 = vmax.f32 %v1974_v55, %v1976_v60 }
 0x280   : > { %601 = vmax.xlane.f32.xlu1 %v600_v26 }
 0x281   : > { %610 = vmax.xlane.f32.xlu2 %v609_v49 }
 0x285   : > { %v1988_v11 = vpop.f32.mrf.mxu2  ;;  %v1990_v12 = vpop.f32.mrf.mxu3 }
 0x288   : > { %607 = vmax.xlane.f32.xlu1 %v606_v54 }
 0x28d   : > { %v1994_v23 = vpop.f32.mrf.mxu2  ;;  %v1996_v26 = vpop.f32.mrf.mxu3 }
 0x290   : > { %613 = vmax.xlane.f32.xlu1 %v612_v61 }
 0x2ab   : > { %v1980_v62 = vpop.xlane.xlu2 %586 }
 0x2b3   : > { %v1982_v3 = vpop.xlane.xlu2 %580  ;;  %v1984_v4 = vpop.xlane.xlu1 %589 }
 0x2b4   : > { %v665_v5 = vsub.f32 %v1868_v41, %v1982_v3 }
 0x2bb   : > { %v1986_v7 = vpop.xlane.xlu1 %583 }
 0x2bc   : > { %v575_v8 = vpop.xlane.xlu2 %574 }
 0x2c3   : > { %v578_v13 = vpop.xlane.xlu1 %577 }
 0x2c4   : > { %v569_v14 = vpop.xlane.xlu2 %568 }
 0x2c5   : > { %v657_v15 = vsub.f32 %v1872_v43, %v569_v14  ;;  %v658_v18 = vsub.f32 %v1874_v44, %v569_v14  ;;  %v661_v43 = vsub.f32 %v1900_v56, %v575_v8  ;;  %v662_v14 = vsub.f32 %v1902_v57, %v575_v8 }
 0x2c6   : > { %v663_v57 = vsub.f32 %v1914_v63, %v578_v13  ;;  %v664_v8 = vsub.f32 %v1916_v0, %v578_v13 }
 0x2c7   : > { %v733_v19 = vmul.f32 1.442695, %v657_v15  ;;  %v735_v22 = vmul.f32 1.442695, %v658_v18  ;;  %v2008_v18 = vpop.f32.mrf.mxu2 }
 0x2c9   : > { %1380 = vpow2.f32 %v733_v19  ;;  %v2010_v19 = vpop.f32.mrf.mxu3 }
 0x2ca   : > { %1382 = vpow2.f32 %v735_v22  ;;  %v743_v22 = vmul.f32 1.442695, %v662_v14  ;;  %v745_v14 = vmul.f32 1.442695, %v663_v57 }
 0x2cb   : > { %v572_v49 = vpop.xlane.xlu1 %571 }
 0x2cc   : > { %v659_v54 = vsub.f32 %v1888_v50, %v572_v49  ;;  %v660_v61 = vsub.f32 %v1890_v51, %v572_v49  ;;  %v741_v50 = vmul.f32 1.442695, %v661_v43  ;;  %v615_v49 = vmax.f32 %v1988_v11, %v1990_v12  ;;  %v2036_v13 = vpop.xlane.xlu2 %562 }
 0x2ce   : > { %v737_v28 = vmul.f32 1.442695, %v659_v54  ;;  %v739_v10 = vmul.f32 1.442695, %v660_v61 }
 0x2cf   : > { %v2000_v27 = vpop.eup %1380  ;;  %v2026_v61 = vpop.f32.mrf.mxu2 }
 0x2d0   : > { %v2003_v44 = vpop.eup %1382  ;;  %1384 = vpow2.f32 %v737_v28 }
 0x2d1   : > { %v855_v15 = vadd.f32 %v2003_v44, %v2000_v27  ;;  %1386 = vpow2.f32 %v739_v10  ;;  %v2028_v43 = vpop.f32.mrf.mxu3 }
 0x2d2   : > { %1388 = vpow2.f32 %v741_v50 }
 0x2d3   : > { %856 = vadd.xlane.f32.xlu2 %v855_v15  ;;  %v2012_v51 = vpop.xlane.xlu1 %565  ;;  %1390 = vpow2.f32 %v743_v22  ;;  %v747_v15 = vmul.f32 1.442695, %v664_v8  ;;  %v618_v22 = vmax.f32 %v1994_v23, %v1996_v26 }
 0x2d4   : > { %1392 = vpow2.f32 %v745_v14 }
 0x2d5   : > { %1394 = vpow2.f32 %v747_v15 }
 0x2d6   : > { %v2014_v56 = vpop.eup %1384 }
 0x2d7   : > { %v2017_v28 = vpop.eup %1386  ;;  %v2044_v9 = vpop.f32.mrf.mxu2 }
 0x2d8   : > { %v858_v10 = vadd.f32 %v2017_v28, %v2014_v56  ;;  %v2030_v63 = vpop.eup %1388 }
 0x2d9   : > { %v2032_v50 = vpop.eup %1390  ;;  %v2046_v14 = vpop.f32.mrf.mxu3 }
 0x2da   : > { %859 = vadd.xlane.f32.xlu1 %v858_v10  ;;  %v861_v0 = vadd.f32 %v2032_v50, %v2030_v63  ;;  %v2042_v8 = vpop.eup %1392 }
 0x2db   : > { %616 = vmax.xlane.f32.xlu2 %v615_v49  ;;  %v2024_v54 = vpop.xlane.xlu1 %559  ;;  %v2048_v6 = vpop.eup %1394 }
 0x2df   : > { %v2062_v41 = vpop.f32.mrf.mxu2 }
 0x2e2   : > { %619 = vmax.xlane.f32.xlu1 %v618_v22  ;;  %v749_v22 = vmul.f32 1.442695, %v665_v5  ;;  %v627_v5 = vmax.f32 %v2044_v9, %v2046_v14 }
 0x2e3   : > { %862 = vadd.xlane.f32.xlu2 %v861_v0  ;;  %v554_v49 = vpop.xlane.xlu1 %553  ;;  %v666_v0 = vsub.f32 %v1870_v42, %v1982_v3  ;;  %v2064_v42 = vpop.f32.mrf.mxu3  ;;  %v667_v3 = vsub.f32 %v1876_v45, %v1986_v7 }
 0x2e4   : > { %v647_v57 = vsub.f32 %v1842_v31, %v554_v49  ;;  %v648_v10 = vsub.f32 %v1844_v32, %v554_v49  ;;  %v621_v31 = vmax.f32 %v2008_v18, %v2010_v19  ;;  %v864_v32 = vadd.f32 %v2048_v6, %v2042_v8 }
 0x2e5   : > { %v751_v49 = vmul.f32 1.442695, %v666_v0 }
 0x2e6   : > { %v713_v15 = vmul.f32 1.442695, %v647_v57  ;;  %v715_v30 = vmul.f32 1.442695, %v648_v10  ;;  %v2058_v57 = vpop.xlane.xlu2 %556 }
 0x2e8   : > { %1396 = vpow2.f32 %v713_v15  ;;  %v624_v15 = vmax.f32 %v2026_v61, %v2028_v43 }
 0x2e9   : > { %1398 = vpow2.f32 %v715_v30  ;;  %v668_v30 = vsub.f32 %v1878_v46, %v1986_v7  ;;  %v669_v46 = vsub.f32 %v1882_v47, %v1980_v62  ;;  %v670_v7 = vsub.f32 %v1884_v48, %v1980_v62 }
 0x2ea   : > { %865 = vadd.xlane.f32.xlu1 %v864_v32  ;;  %1400 = vpow2.f32 %v749_v22  ;;  %v671_v48 = vsub.f32 %v1892_v52, %v1984_v4 }
 0x2eb   : > { %622 = vmax.xlane.f32.xlu2 %v621_v31  ;;  %1402 = vpow2.f32 %v751_v49  ;;  %v753_v31 = vmul.f32 1.442695, %v667_v3  ;;  %v755_v45 = vmul.f32 1.442695, %v668_v30  ;;  %v630_v30 = vmax.f32 %v2062_v41, %v2064_v42 }
 0x2ed   : > { %1404 = vpow2.f32 %v753_v31 }
 0x2ee   : > { %v2060_v21 = vpop.eup %1396  ;;  %v2082_v49 = vpop.xlane.xlu2 %550  ;;  %1406 = vpow2.f32 %v755_v45 }
 0x2ef   : > { %2673 = vst [vmem:[#allocation18_spill] sm:$0xff] %v2060_v21  ;;  %v2068_v10 = vpop.eup %1398 }
 0x2f0   : > { %2674 = vst [vmem:[#allocation19_spill] sm:$0xff] %v2068_v10  ;;  %v840_v0 = vadd.f32 %v2068_v10, %v2060_v21  ;;  %v2078_v32 = vpop.eup %1400  ;;  %v759_v10 = vmul.f32 1.442695, %v670_v7  ;;  %v593_v21 = vpop.xlane.xlu0 %592 }
 0x2f1   : > { %2675 = vst [vmem:[#allocation20_spill] sm:$0xff] %v2078_v32  ;;  %v2080_v22 = vpop.eup %1402  ;;  %v673_v31 = vsub.f32 %v1904_v58, %v593_v21  ;;  %v674_v45 = vsub.f32 %v1906_v59, %v593_v21 }
 0x2f2   : > { %625 = vmax.xlane.f32.xlu1 %v624_v15  ;;  %841 = vadd.xlane.f32.xlu0 %v840_v0  ;;  %2676 = vst [vmem:[#allocation21_spill] sm:$0xff] %v2082_v49  ;;  %v867_v3 = vadd.f32 %v2080_v22, %v2078_v32  ;;  %v2092_v15 = vpop.f32.mrf.mxu3  ;;  %v757_v0 = vmul.f32 1.442695, %v669_v46  ;;  %v672_v46 = vsub.f32 %v1894_v53, %v1984_v4 }
 0x2f3   : > { %628 = vmax.xlane.f32.xlu2 %v627_v5  ;;  %v2090_v5 = vpop.f32.mrf.mxu2  ;;  %v2096_v47 = vpop.eup %1404 }
 0x2f4   : > { %2677 = vst [vmem:[#allocation22_spill] sm:$0xff] %v2096_v47  ;;  %v2100_v62 = vpop.eup %1406  ;;  %1408 = vpow2.f32 %v757_v0  ;;  %v633_v7 = vmax.f32 %v2090_v5, %v2092_v15  ;;  %v767_v0 = vmul.f32 1.442695, %v674_v45  ;;  %v763_v21 = vmul.f32 1.442695, %v672_v46 }
 0x2f5   : > { %1410 = vpow2.f32 %v759_v10  ;;  %v870_v52 = vadd.f32 %v2100_v62, %v2096_v47 }
 0x2f6   : > { %v2104_v32 = vpop.xlane.xlu2 %598 }
 0x2f7   : > { %2678 = vst [vmem:[#allocation23_spill] sm:$0xff] %v2104_v32 }
 0x2fa   : > { %631 = vmax.xlane.f32.xlu1 %v630_v30  ;;  %v765_v30 = vmul.f32 1.442695, %v673_v31  ;;  %v2114_v58 = vpop.f32.mrf.mxu3  ;;  %v2116_v59 = vpop.eup %1408 }
 0x2fb   : > { %868 = vadd.xlane.f32.xlu2 %v867_v3  ;;  %v761_v3 = vmul.f32 1.442695, %v671_v48  ;;  %v2112_v29 = vpop.f32.mrf.mxu2  ;;  %2679 = vst [vmem:[#allocation24_spill] sm:$0xff] %v2116_v59  ;;  %v2118_v10 = vpop.eup %1410 }
 0x2fc   : > { %v873_v53 = vadd.f32 %v2118_v10, %v2116_v59  ;;  %v636_v48 = vmax.f32 %v2112_v29, %v2114_v58 }
 0x2fd   : > { %1412 = vpow2.f32 %v761_v3 }
 0x2fe   : > { %1414 = vpow2.f32 %v765_v30  ;;  %v2122_v4 = vpop.xlane.xlu2 %604 }
 0x2ff   : > { %1416 = vpow2.f32 %v767_v0  ;;  %v654_v0 = vsub.f32 %v1860_v38, %v2036_v13 }
 0x300   : > { %1418 = vpow2.f32 %v763_v21  ;;  %v655_v21 = vsub.f32 %v1862_v39, %v2012_v51 }
 0x301   : > { %v727_v32 = vmul.f32 1.442695, %v654_v0 }
 0x302   : > { %871 = vadd.xlane.f32.xlu1 %v870_v52  ;;  %v2130_v46 = vpop.f32.mrf.mxu3  ;;  %v653_v52 = vsub.f32 %v1858_v37, %v2036_v13  ;;  %v596_v37 = vpop.xlane.xlu1 %595  ;;  %v729_v49 = vmul.f32 1.442695, %v655_v21 }
 0x303   : > { %634 = vmax.xlane.f32.xlu2 %v633_v7  ;;  %v2126_v31 = vpop.eup %1412  ;;  %v2128_v45 = vpop.f32.mrf.mxu2  ;;  %v675_v39 = vsub.f32 %v1918_v1, %v596_v37  ;;  %v676_v0 = vsub.f32 %v1920_v2, %v596_v37 }
 0x304   : > { %v2132_v7 = vpop.eup %1414  ;;  %v725_v47 = vmul.f32 1.442695, %v653_v52  ;;  %v639_v1 = vmax.f32 %v2128_v45, %v2130_v46 }
 0x305   : > { %v2134_v3 = vpop.eup %1416  ;;  %v769_v21 = vmul.f32 1.442695, %v675_v39 }
 0x306   : > { %v2138_v30 = vpop.eup %1418  ;;  %v611_v20 = vpop.xlane.xlu2 %610  ;;  %1420 = vpow2.f32 %v725_v47 }
 0x307   : > { %v876_v59 = vadd.f32 %v2138_v30, %v2126_v31  ;;  %1422 = vpow2.f32 %v727_v32  ;;  %v686_v52 = vsub.f32 %v1966_v25, %v611_v20 }
 0x308   : > { %1424 = vpow2.f32 %v729_v49  ;;  %v771_v49 = vmul.f32 1.442695, %v676_v0 }
 0x309   : > { %v791_v32 = vmul.f32 1.442695, %v686_v52 }
 0x30a   : > { %637 = vmax.xlane.f32.xlu1 %v636_v48  ;;  %v879_v48 = vadd.f32 %v2134_v3, %v2132_v7 }
 0x30b   : > { %874 = vadd.xlane.f32.xlu2 %v873_v53  ;;  %v656_v53 = vsub.f32 %v1864_v40, %v2012_v51  ;;  %v2151_v13 = vpop.f32.mrf.mxu2  ;;  %v2153_v40 = vpop.f32.mrf.mxu3  ;;  %v685_v51 = vsub.f32 %v1964_v24, %v611_v20 }
 0x30d   : > { %v731_v38 = vmul.f32 1.442695, %v656_v53  ;;  %v789_v47 = vmul.f32 1.442695, %v685_v51  ;;  %v2162_v53 = vpop.eup %1420 }
 0x30e   : > { %2680 = vst [vmem:[#allocation25_spill] sm:$0xff] %v2162_v53  ;;  %v2164_v24 = vpop.eup %1422 }
 0x30f   : > { %1426 = vpow2.f32 %v731_v38  ;;  %v2166_v20 = vpop.eup %1424  ;;  %v849_v25 = vadd.f32 %v2164_v24, %v2162_v53 }
 0x310   : > { %2681 = vst [vmem:[#allocation26_spill] sm:$0xff] %v2166_v20  ;;  %1428 = vpow2.f32 %v769_v21 }
 0x311   : > { %1430 = vpow2.f32 %v789_v47 }
 0x312   : > { %877 = vadd.xlane.f32.xlu1 %v876_v59  ;;  %v642_v59 = vmax.f32 %v2151_v13, %v2153_v40  ;;  %1432 = vpow2.f32 %v791_v32 }
 0x313   : > { %880 = vadd.xlane.f32.xlu2 %v879_v48  ;;  %1434 = vpow2.f32 %v771_v49 }
 0x315   : > { %v2168_v2 = vpop.eup %1426 }
 0x316   : > { %v852_v48 = vadd.f32 %v2168_v2, %v2166_v20  ;;  %v2174_v37 = vpop.eup %1428 }
 0x317   : > { %v2176_v38 = vpop.eup %1430 }
 0x318   : > { %2682 = vst [vmem:[#allocation27_spill] sm:$0xff] %v2176_v38  ;;  %v2178_v39 = vpop.eup %1432 }
 0x319   : > { %2683 = vst [vmem:[#allocation28_spill] sm:$0xff] %v2178_v39  ;;  %v2180_v51 = vpop.eup %1434  ;;  %v897_v52 = vadd.f32 %v2178_v39, %v2176_v38 }
 0x31a   : > { %640 = vmax.xlane.f32.xlu1 %v639_v1  ;;  %v882_v0 = vadd.f32 %v2180_v51, %v2174_v37 }
 0x31b   : > { %643 = vmax.xlane.f32.xlu2 %v642_v59  ;;  %v2186_v59 = vpop.xlane.xlu1 %601 }
 0x31c   : > { %2684 = vst [vmem:[#allocation29_spill] sm:$0xff] %v2186_v59 }
 0x322   : > { %853 = vadd.xlane.f32.xlu1 %v852_v48 }
 0x323   : > { %850 = vadd.xlane.f32.xlu2 %v849_v25  ;;  %v2188_v21 = vpop.xlane.xlu1 %607 }
 0x32a   : > { %883 = vadd.xlane.f32.xlu1 %v882_v0 }
 0x32b   : > { %898 = vadd.xlane.f32.xlu2 %v897_v52  ;;  %v2190_v47 = vpop.xlane.xlu1 %613 }
 0x346   : > { %v857_v1 = vpop.xlane.xlu2 %856 }
 0x347   : > { %1436 = vrcp.f32 %v857_v1 }
 0x34d   : > { %v860_v48 = vpop.xlane.xlu1 %859  ;;  %v1437_v52 = vpop.eup %1436 }
 0x34e   : > { %v617_v32 = vpop.xlane.xlu2 %616  ;;  %1438 = vrcp.f32 %v860_v48  ;;  %v2195_v59 = vmul.f32 %v1437_v52, %v2000_v27 }
 0x34f   : > { %v689_v49 = vsub.f32 %v1988_v11, %v617_v32  ;;  %v690_v25 = vsub.f32 %v1990_v12, %v617_v32  ;;  %v2201_v11 = vmul.f32 %v1437_v52, %v2003_v44 }
 0x351   : > { %v797_v39 = vmul.f32 1.442695, %v689_v49  ;;  %v799_v38 = vmul.f32 1.442695, %v690_v25  ;;  %2685 = vst [vmem:[#allocation30_spill] sm:$0xff] %v2201_v11 }
 0x353   : > { %1440 = vpow2.f32 %v797_v39 }
 0x354   : > { %1442 = vpow2.f32 %v799_v38  ;;  %v1439_v0 = vpop.eup %1438 }
 0x355   : > { %v620_v53 = vpop.xlane.xlu1 %619  ;;  %v2198_v1 = vmul.f32 %v1439_v0, %v2014_v56  ;;  %v2204_v12 = vmul.f32 %v1439_v0, %v2017_v28 }
 0x356   : > { %v863_v20 = vpop.xlane.xlu2 %862  ;;  %v691_v32 = vsub.f32 %v1994_v23, %v620_v53  ;;  %v692_v39 = vsub.f32 %v1996_v26, %v620_v53 }
 0x357   : > { %1444 = vrcp.f32 %v863_v20 }
 0x358   : > { %v801_v25 = vmul.f32 1.442695, %v691_v32  ;;  %v803_v44 = vmul.f32 1.442695, %v692_v39 }
 0x359   : > { %v2208_v38 = vpop.eup %1440 }
 0x35a   : > { %v2214_v56 = vpop.eup %1442  ;;  %1446 = vpow2.f32 %v801_v25 }
 0x35b   : > { %2686 = vst [vmem:[#allocation31_spill] sm:$0xff] %v2214_v56  ;;  %v903_v28 = vadd.f32 %v2214_v56, %v2208_v38  ;;  %1448 = vpow2.f32 %v803_v44 }
 0x35d   : > { %904 = vadd.xlane.f32.xlu2 %v903_v28  ;;  %v866_v48 = vpop.xlane.xlu1 %865  ;;  %v1445_v52 = vpop.eup %1444 }
 0x35e   : > { %v623_v23 = vpop.xlane.xlu2 %622  ;;  %1450 = vrcp.f32 %v866_v48 }
 0x35f   : > { %v693_v26 = vsub.f32 %v2008_v18, %v623_v23  ;;  %v694_v53 = vsub.f32 %v2010_v19, %v623_v23  ;;  %v2227_v18 = vmul.f32 %v1445_v52, %v2030_v63  ;;  %v2230_v19 = vmul.f32 %v1445_v52, %v2032_v50 }
 0x360   : > { %v2220_v49 = vpop.eup %1446 }
 0x361   : > { %v805_v0 = vmul.f32 1.442695, %v693_v26  ;;  %v807_v27 = vmul.f32 1.442695, %v694_v53  ;;  %v2222_v32 = vpop.eup %1448 }
 0x362   : > { %2687 = vst [vmem:[#allocation32_spill] sm:$0xff] %v2222_v32  ;;  %v906_v20 = vadd.f32 %v2222_v32, %v2220_v49 }
 0x363   : > { %1452 = vpow2.f32 %v805_v0 }
 0x364   : > { %1454 = vpow2.f32 %v807_v27  ;;  %v1451_v39 = vpop.eup %1450  ;;  %907 = vadd.xlane.f32.xlu1 %v906_v20 }
 0x365   : > { %v626_v23 = vpop.xlane.xlu1 %625  ;;  %v2235_v26 = vmul.f32 %v1451_v39, %v2042_v8  ;;  %v2238_v27 = vmul.f32 %v1451_v39, %v2048_v6 }
 0x366   : > { %v629_v25 = vpop.xlane.xlu2 %628  ;;  %v695_v53 = vsub.f32 %v2026_v61, %v626_v23  ;;  %v696_v48 = vsub.f32 %v2028_v43, %v626_v23 }
 0x367   : > { %v697_v44 = vsub.f32 %v2044_v9, %v629_v25  ;;  %v698_v28 = vsub.f32 %v2046_v14, %v629_v25 }
 0x368   : > { %v809_v8 = vmul.f32 1.442695, %v695_v53  ;;  %v811_v20 = vmul.f32 1.442695, %v696_v48 }
 0x369   : > { %v2242_v63 = vpop.eup %1452  ;;  %v813_v0 = vmul.f32 1.442695, %v697_v44  ;;  %v815_v50 = vmul.f32 1.442695, %v698_v28 }
 0x36a   : > { %v2248_v52 = vpop.eup %1454 }
 0x36b   : > { %2688 = vst [vmem:[#allocation33_spill] sm:$0xff] %v2248_v52  ;;  %1456 = vpow2.f32 %v813_v0  ;;  %v909_v6 = vadd.f32 %v2248_v52, %v2242_v63 }
 0x36c   : > { %1458 = vpow2.f32 %v815_v50 }
 0x36d   : > { %1460 = vpow2.f32 %v809_v8  ;;  %910 = vadd.xlane.f32.xlu2 %v909_v6  ;;  %v632_v43 = vpop.xlane.xlu1 %631 }
 0x36e   : > { %1462 = vpow2.f32 %v811_v20  ;;  %v869_v61 = vpop.xlane.xlu2 %868  ;;  %v699_v39 = vsub.f32 %v2062_v41, %v632_v43  ;;  %v700_v25 = vsub.f32 %v2064_v42, %v632_v43 }
 0x370   : > { %v817_v23 = vmul.f32 1.442695, %v699_v39  ;;  %v819_v53 = vmul.f32 1.442695, %v700_v25 }
 0x371   : > { %v2254_v44 = vpop.eup %1456 }
 0x372   : > { %v2256_v28 = vpop.eup %1458  ;;  %1464 = vpow2.f32 %v817_v23 }
 0x373   : > { %v2258_v48 = vpop.eup %1460  ;;  %v915_v0 = vadd.f32 %v2256_v28, %v2254_v44  ;;  %1466 = vpow2.f32 %v819_v53 }
 0x374   : > { %v2262_v50 = vpop.eup %1462  ;;  %1468 = vrcp.f32 %v869_v61 }
 0x375   : > { %916 = vadd.xlane.f32.xlu2 %v915_v0  ;;  %v912_v41 = vadd.f32 %v2262_v50, %v2258_v48  ;;  %v872_v6 = vpop.xlane.xlu1 %871 }
 0x376   : > { %v635_v42 = vpop.xlane.xlu2 %634  ;;  %1470 = vrcp.f32 %v872_v6 }
 0x377   : > { %913 = vadd.xlane.f32.xlu1 %v912_v41  ;;  %v701_v8 = vsub.f32 %v2090_v5, %v635_v42  ;;  %v702_v20 = vsub.f32 %v2092_v15, %v635_v42 }
 0x378   : > { %v2268_v25 = vpop.eup %1464 }
 0x379   : > { %v821_v43 = vmul.f32 1.442695, %v701_v8  ;;  %v823_v39 = vmul.f32 1.442695, %v702_v20  ;;  %v2270_v14 = vpop.eup %1466 }
 0x37a   : > { %v2272_v23 = vpop.eup %1468  ;;  %v918_v61 = vadd.f32 %v2270_v14, %v2268_v25 }
 0x37b   : > { %1472 = vpow2.f32 %v821_v43  ;;  %v2280_v0 = vmul.f32 %v2272_v23, %v2080_v22 }
 0x37c   : > { %1474 = vpow2.f32 %v823_v39  ;;  %v2276_v53 = vpop.eup %1470 }
 0x37d   : > { %v638_v15 = vpop.xlane.xlu1 %637  ;;  %v2284_v41 = vmul.f32 %v2276_v53, %v2100_v62 }
 0x37e   : > { %v875_v5 = vpop.xlane.xlu2 %874  ;;  %v703_v42 = vsub.f32 %v2112_v29, %v638_v15  ;;  %v704_v8 = vsub.f32 %v2114_v58, %v638_v15 }
 0x37f   : > { %919 = vadd.xlane.f32.xlu1 %v918_v61 }
 0x380   : > { %v825_v39 = vmul.f32 1.442695, %v703_v42  ;;  %v827_v61 = vmul.f32 1.442695, %v704_v8 }
 0x381   : > { %v2288_v20 = vpop.eup %1472 }
 0x382   : > { %v2292_v43 = vpop.eup %1474  ;;  %1476 = vpow2.f32 %v825_v39 }
 0x383   : > { %v921_v22 = vadd.f32 %v2292_v43, %v2288_v20  ;;  %1478 = vpow2.f32 %v827_v61 }
 0x384   : > { %1480 = vrcp.f32 %v875_v5 }
 0x385   : > { %922 = vadd.xlane.f32.xlu2 %v921_v22  ;;  %v878_v29 = vpop.xlane.xlu1 %877 }
 0x386   : > { %v881_v62 = vpop.xlane.xlu2 %880  ;;  %1482 = vrcp.f32 %v878_v29 }
 0x388   : > { %v2296_v58 = vpop.eup %1476 }
 0x389   : > { %v2298_v15 = vpop.eup %1478 }
 0x38a   : > { %v2300_v9 = vpop.eup %1480  ;;  %v924_v42 = vadd.f32 %v2298_v15, %v2296_v58 }
 0x38b   : > { %v2310_v22 = vmul.f32 %v2300_v9, %v2118_v10  ;;  %v688_v10 = vsub.f32 %v1976_v60, %v2190_v47 }
 0x38c   : > { %v2304_v8 = vpop.eup %1482  ;;  %925 = vadd.xlane.f32.xlu1 %v924_v42  ;;  %v687_v42 = vsub.f32 %v1974_v55, %v2190_v47 }
 0x38d   : > { %v641_v61 = vpop.xlane.xlu1 %640  ;;  %v2314_v29 = vmul.f32 %v2304_v8, %v2138_v30  ;;  %v649_v30 = vsub.f32 %v1848_v33, %v2058_v57  ;;  %v795_v55 = vmul.f32 1.442695, %v688_v10  ;;  %v651_v33 = vsub.f32 %v1852_v35, %v2024_v54 }
 0x38e   : > { %v644_v6 = vpop.xlane.xlu2 %643  ;;  %v705_v56 = vsub.f32 %v2128_v45, %v641_v61  ;;  %v706_v32 = vsub.f32 %v2130_v46, %v641_v61  ;;  %v650_v45 = vsub.f32 %v1850_v34, %v2058_v57  ;;  %v793_v46 = vmul.f32 1.442695, %v687_v42 }
 0x38f   : > { %v707_v39 = vsub.f32 %v2151_v13, %v644_v6  ;;  %v708_v5 = vsub.f32 %v2153_v40, %v644_v6  ;;  %v652_v34 = vsub.f32 %v1854_v36, %v2024_v54  ;;  %v682_v35 = vsub.f32 %v1950_v17, %v2122_v4 }
 0x390   : > { %v829_v6 = vmul.f32 1.442695, %v705_v56  ;;  %v831_v11 = vmul.f32 1.442695, %v706_v32  ;;  %v719_v40 = vmul.f32 1.442695, %v650_v45 }
 0x391   : > { %v833_v52 = vmul.f32 1.442695, %v707_v39  ;;  %v835_v13 = vmul.f32 1.442695, %v708_v5  ;;  %v717_v5 = vmul.f32 1.442695, %v649_v30 }
 0x392   : > { %v721_v42 = vmul.f32 1.442695, %v651_v33  ;;  %v783_v30 = vmul.f32 1.442695, %v682_v35 }
 0x393   : > { %1484 = vpow2.f32 %v833_v52 }
 0x394   : > { %1486 = vpow2.f32 %v835_v13  ;;  %v723_v13 = vmul.f32 1.442695, %v652_v34 }
 0x395   : > { %1488 = vpow2.f32 %v829_v6  ;;  %v854_v61 = vpop.xlane.xlu1 %853 }
 0x396   : > { %1490 = vpow2.f32 %v831_v11  ;;  %v851_v39 = vpop.xlane.xlu2 %850  ;;  %v681_v11 = vsub.f32 %v1948_v16, %v2122_v4 }
 0x397   : > { %1492 = vrcp.f32 %v851_v39  ;;  %v2690_v39 = vld [vmem:[#allocation21_spill] sm:$0xff] }
 0x398   : > { %1494 = vrcp.f32 %v854_v61 }
 0x399   : > { %v2328_v60 = vpop.eup %1484  ;;  %1496 = vpow2.f32 %v793_v46 }
 0x39a   : > { %v2332_v47 = vpop.eup %1486  ;;  %1498 = vpow2.f32 %v795_v55 }
 0x39b   : > { %v2336_v57 = vpop.eup %1488  ;;  %1500 = vpow2.f32 %v717_v5  ;;  %v930_v56 = vadd.f32 %v2332_v47, %v2328_v60  ;;  %v2691_v5 = vld [vmem:[#allocation10_spill] sm:$0xff] }
 0x39c   : > { %v2342_v32 = vpop.eup %1490  ;;  %1502 = vpow2.f32 %v719_v40  ;;  %v781_v40 = vmul.f32 1.442695, %v681_v11  ;;  %v645_v61 = vsub.f32 %v2691_v5, %v2690_v39 }
 0x39d   : > { %v2346_v52 = vpop.eup %1492  ;;  %931 = vadd.xlane.f32.xlu1 %v930_v56  ;;  %v927_v36 = vadd.f32 %v2342_v32, %v2336_v57  ;;  %1504 = vrcp.f32 %v881_v62  ;;  %v884_v17 = vpop.xlane.xlu1 %883  ;;  %v2689_v62 = vld [vmem:[#allocation16_spill] sm:$0xff]  ;;  %v2693_v56 = vld [vmem:[#allocation11_spill] sm:$0xff] }
 0x39e   : > { %v2350_v54 = vpop.eup %1494  ;;  %v2354_v16 = vmul.f32 %v2346_v52, %v2164_v24  ;;  %1506 = vrcp.f32 %v884_v17  ;;  %v683_v24 = vsub.f32 %v2689_v62, %v2188_v21  ;;  %v646_v35 = vsub.f32 %v2693_v56, %v2690_v39  ;;  %v2695_v56 = vld [vmem:[#allocation12_spill] sm:$0xff] }
 0x39f   : > { %v2356_v10 = vpop.eup %1496  ;;  %928 = vadd.xlane.f32.xlu2 %v927_v36  ;;  %v2360_v4 = vmul.f32 %v2350_v54, %v2168_v2  ;;  %1508 = vpow2.f32 %v721_v42  ;;  %v2692_v2 = vld [vmem:[#allocation17_spill] sm:$0xff]  ;;  %v709_v62 = vmul.f32 1.442695, %v645_v61 }
 0x3a0   : > { %v2362_v6 = vpop.eup %1498  ;;  %1510 = vpow2.f32 %v723_v13  ;;  %v684_v33 = vsub.f32 %v2692_v2, %v2188_v21  ;;  %v785_v42 = vmul.f32 1.442695, %v683_v24  ;;  %v711_v24 = vmul.f32 1.442695, %v646_v35  ;;  %v2697_v35 = vld [vmem:[#allocation29_spill] sm:$0xff] }
 0x3a1   : > { %v2364_v45 = vpop.eup %1500  ;;  %1512 = vpow2.f32 %v781_v40  ;;  %v900_v34 = vadd.f32 %v2362_v6, %v2356_v10 }
 0x3a2   : > { %v2370_v55 = vpop.eup %1502  ;;  %1514 = vpow2.f32 %v783_v30  ;;  %v787_v13 = vmul.f32 1.442695, %v684_v33 }
 0x3a3   : > { %v1505_v11 = vpop.eup %1504  ;;  %v843_v36 = vadd.f32 %v2370_v55, %v2364_v45  ;;  %1516 = vpow2.f32 %v785_v42 }
 0x3a4   : > { %v1507_v17 = vpop.eup %1506  ;;  %v993_v21 = vmul.f32 %v1505_v11, %v2132_v7  ;;  %v2386_v40 = vmul.f32 %v1505_v11, %v2134_v3  ;;  %v991_v7 = vmul.f32 %v2304_v8, %v2126_v31  ;;  %1518 = vpow2.f32 %v787_v13  ;;  %v2700_v8 = vld [vmem:[#allocation15_spill] sm:$0xff] }
 0x3a5   : > { %901 = vadd.xlane.f32.xlu1 %v900_v34  ;;  %v2382_v5 = vpop.eup %1508  ;;  %v995_v2 = vmul.f32 %v1507_v17, %v2174_v37  ;;  %v2390_v39 = vmul.f32 %v1507_v17, %v2180_v51  ;;  %v2694_v34 = vld [vmem:[#allocation23_spill] sm:$0xff]  ;;  %v2696_v51 = vld [vmem:[#allocation13_spill] sm:$0xff]  ;;  %1520 = vpow2.f32 %v709_v62 }
 0x3a6   : > { %v2392_v30 = vpop.eup %1510  ;;  %v677_v61 = vsub.f32 %v2695_v56, %v2694_v34  ;;  %v678_v11 = vsub.f32 %v2696_v51, %v2694_v34  ;;  %1522 = vpow2.f32 %v711_v24  ;;  %v2701_v34 = vld [vmem:[#allocation22_spill] sm:$0xff] }
 0x3a7   : > { %844 = vadd.xlane.f32.xlu2 %v843_v36  ;;  %v2396_v33 = vpop.eup %1512  ;;  %v1043_v46 = vpack.c.bf16 %v995_v2, %v993_v21  ;;  %v2698_v36 = vld [vmem:[#allocation14_spill] sm:$0xff]  ;;  %v846_v42 = vadd.f32 %v2392_v30, %v2382_v5  ;;  %v2699_v21 = vld [vmem:[#allocation24_spill] sm:$0xff]  ;;  %v680_v2 = vsub.f32 %v2700_v8, %v2697_v35  ;;  %v987_v51 = vmul.f32 %v2276_v53, %v2701_v34 }
 0x3a8   : > { %v2402_v37 = vpop.eup %1514  ;;  %v679_v17 = vsub.f32 %v2698_v36, %v2697_v35  ;;  %v989_v31 = vmul.f32 %v2300_v9, %v2699_v21  ;;  %v773_v56 = vmul.f32 1.442695, %v677_v61  ;;  %v2702_v9 = vld [vmem:[#allocation20_spill] sm:$0xff]  ;;  %v2706_v34 = vpack.c.bf16 %v2198_v1, %v2195_v59 }
 0x3a9   : > { %1061 = vmatpush.bf16.msra.mxu0 %v1043_v46  ;;  %v891_v13 = vadd.f32 %v2402_v37, %v2396_v33  ;;  %v775_v46 = vmul.f32 1.442695, %v678_v11  ;;  %v2418_v36 = vpop.eup %1516  ;;  %v985_v24 = vmul.f32 %v2272_v23, %v2702_v9  ;;  %v779_v61 = vmul.f32 1.442695, %v680_v2 }
 0x3aa   : > { %v1041_v62 = vpack.c.bf16 %v991_v7, %v989_v31  ;;  %v777_v3 = vmul.f32 1.442695, %v679_v17  ;;  %v2422_v21 = vpop.eup %1518  ;;  %1524 = vpow2.f32 %v773_v56  ;;  %v2703_v17 = vpack.c.bf16 %v2235_v26, %v2227_v18  ;;  %v2705_v56 = vld [vmem:[#allocation26_spill] sm:$0xff] }
 0x3ab   : > { %v2424_v35 = vpop.eup %1520  ;;  %1526 = vpow2.f32 %v775_v46  ;;  %v894_v53 = vadd.f32 %v2422_v21, %v2418_v36 }
 0x3ac   : > { %v2426_v7 = vpop.eup %1522  ;;  %1528 = vpow2.f32 %v777_v3  ;;  %v2704_v3 = vld [vmem:[#allocation25_spill] sm:$0xff] }
 0x3ad   : > { %847 = vadd.xlane.f32.xlu1 %v846_v42  ;;  %1062 = vmatpush.bf16.msra.mxu0 %v1041_v62  ;;  %v1039_v42 = vpack.c.bf16 %v987_v51, %v985_v24  ;;  %1530 = vpow2.f32 %v779_v61  ;;  %v837_v23 = vadd.f32 %v2426_v7, %v2424_v35  ;;  %v973_v2 = vmul.f32 %v2346_v52, %v2704_v3  ;;  %v899_v52 = vpop.xlane.xlu2 %898 }
 0x3af   : > { %892 = vadd.xlane.f32.xlu2 %v891_v13  ;;  %v975_v13 = vmul.f32 %v2350_v54, %v2705_v56 }
 0x3b0   : > { %v2432_v11 = vpop.eup %1524 }
 0x3b1   : > { %1063 = vmatpush.bf16.msra.mxu0 %v1039_v42  ;;  %v2437_v31 = vpop.eup %1526  ;;  %v1033_v51 = vpack.c.bf16 %v975_v13, %v973_v2 }
 0x3b2   : > { %v2439_v8 = vpop.eup %1528  ;;  %v885_v18 = vadd.f32 %v2437_v31, %v2432_v11 }
 0x3b3   : > { %v2445_v62 = vpop.eup %1530 }
 0x3b4   : > { %v888_v26 = vadd.f32 %v2445_v62, %v2439_v8 }
 0x3b5   : > { %895 = vadd.xlane.f32.xlu1 %v894_v53  ;;  %1064 = vmatpush.bf16.msra.mxu0 %v2703_v17 }
 0x3b7   : > { %838 = vadd.xlane.f32.xlu2 %v837_v23 }
 0x3b9   : > { %1065 = vmatpush.bf16.msra.mxu0 %v2706_v34 }
 0x3bd   : > { %886 = vadd.xlane.f32.xlu1 %v885_v18  ;;  %1066 = vmatpush.bf16.msra.mxu0 %v1033_v51 }
 0x3bf   : > { %889 = vadd.xlane.f32.xlu2 %v888_v26 }
 0x3d0   : > { %v905_v9 = vpop.xlane.xlu2 %904 }
 0x3d7   : > { %v908_v46 = vpop.xlane.xlu1 %907 }
 0x3e0   : > { %v911_v24 = vpop.xlane.xlu2 %910 }
 0x3e8   : > { %v917_v42 = vpop.xlane.xlu2 %916 }
 0x3ea   : > { %v914_v54 = vpop.xlane.xlu1 %913 }
 0x3f2   : > { %v920_v61 = vpop.xlane.xlu1 %919 }
 0x3f8   : > { %v923_v59 = vpop.xlane.xlu2 %922 }
 0x3ff   : > { %v926_v53 = vpop.xlane.xlu1 %925 }
 0x410   : > { %v932_v1 = vpop.xlane.xlu1 %931 }
 0x411   : > { %1532 = vrcp.f32 %v932_v1 }
 0x412   : > { %1534 = vrcp.f32 %v926_v53  ;;  %v929_v23 = vpop.xlane.xlu2 %928 }
 0x413   : > { %1536 = vrcp.f32 %v929_v23 }
 0x414   : > { %1538 = vrcp.f32 %v923_v59 }
 0x415   : > { %1540 = vrcp.f32 %v920_v61 }
 0x416   : > { %1542 = vrcp.f32 %v917_v42 }
 0x417   : > { %v2454_v17 = vpop.eup %1532  ;;  %1544 = vrcp.f32 %v914_v54 }
 0x418   : > { %v2456_v3 = vpop.eup %1534  ;;  %v1027_v2 = vmul.f32 %v2454_v17, %v2328_v60  ;;  %v902_v56 = vpop.xlane.xlu1 %901  ;;  %1546 = vrcp.f32 %v911_v24 }
 0x419   : > { %v2460_v13 = vpop.eup %1536  ;;  %v1023_v61 = vmul.f32 %v2456_v3, %v2296_v58  ;;  %1548 = vrcp.f32 %v908_v46 }
 0x41a   : > { %v1025_v34 = vmul.f32 %v2460_v13, %v2336_v57  ;;  %v845_v18 = vpop.xlane.xlu2 %844  ;;  %v2464_v26 = vpop.eup %1538 }
 0x41b   : > { %v2468_v53 = vpop.eup %1540  ;;  %v1021_v60 = vmul.f32 %v2464_v26, %v2288_v20  ;;  %1550 = vrcp.f32 %v845_v18  ;;  %v842_v20 = vpop.xlane.xlu0 %841 }
 0x41c   : > { %v1059_v51 = vpack.c.bf16 %v1027_v2, %v1025_v34  ;;  %v2472_v42 = vpop.eup %1542  ;;  %1552 = vrcp.f32 %v905_v9  ;;  %v1019_v54 = vmul.f32 %v2468_v53, %v2268_v25 }
 0x41d   : > { %v1057_v57 = vpack.c.bf16 %v1023_v61, %v1021_v60  ;;  %v2476_v1 = vpop.eup %1544  ;;  %v1017_v46 = vmul.f32 %v2472_v42, %v2254_v44 }
 0x41e   : > { %1074 = vmatpush.bf16.msra.mxu1 %v1059_v51  ;;  %v2480_v24 = vpop.eup %1546  ;;  %v1015_v2 = vmul.f32 %v2476_v1, %v2258_v48 }
 0x41f   : > { %v2482_v23 = vpop.eup %1548  ;;  %v1055_v9 = vpack.c.bf16 %v1019_v54, %v1017_v46  ;;  %v1013_v44 = vmul.f32 %v2480_v24, %v2242_v63  ;;  %v2707_v46 = vld [vmem:[#allocation27_spill] sm:$0xff] }
 0x420   : > { %v848_v59 = vpop.xlane.xlu1 %847 }
 0x421   : > { %1554 = vrcp.f32 %v848_v59  ;;  %v2486_v34 = vpop.eup %1550 }
 0x422   : > { %v893_v58 = vpop.xlane.xlu2 %892  ;;  %1075 = vmatpush.bf16.msra.mxu1 %v1057_v57  ;;  %1556 = vrcp.f32 %v902_v56  ;;  %v2488_v25 = vpop.eup %1552  ;;  %v1053_v56 = vpack.c.bf16 %v1015_v2, %v1013_v44  ;;  %v969_v61 = vmul.f32 %v2486_v34, %v2364_v45 }
 0x423   : > { %1558 = vrcp.f32 %v899_v52  ;;  %v1011_v52 = vmul.f32 %v2482_v23, %v2220_v49  ;;  %v1009_v59 = vmul.f32 %v2488_v25, %v2208_v38 }
 0x424   : > { %1560 = vrcp.f32 %v842_v20 }
 0x425   : > { %1562 = vrcp.f32 %v893_v58  ;;  %v1051_v45 = vpack.c.bf16 %v1011_v52, %v1009_v59 }
 0x426   : > { %1076 = vmatpush.bf16.msra.mxu1 %v1055_v9 }
 0x427   : > { %v2492_v18 = vpop.eup %1554 }
 0x428   : > { %v896_v51 = vpop.xlane.xlu1 %895  ;;  %v971_v48 = vmul.f32 %v2492_v18, %v2382_v5  ;;  %v2500_v60 = vpop.eup %1556 }
 0x429   : > { %1564 = vrcp.f32 %v896_v51  ;;  %v2504_v54 = vpop.eup %1558  ;;  %v1007_v5 = vmul.f32 %v2500_v60, %v2356_v10 }
 0x42a   : > { %v839_v57 = vpop.xlane.xlu2 %838  ;;  %1077 = vmatpush.bf16.msra.mxu1 %v1053_v56  ;;  %v1031_v63 = vpack.c.bf16 %v971_v48, %v969_v61  ;;  %v2506_v58 = vpop.eup %1560  ;;  %v1005_v20 = vmul.f32 %v2504_v54, %v2707_v46  ;;  %v2708_v48 = vld [vmem:[#allocation18_spill] sm:$0xff] }
 0x42b   : > { %1566 = vrcp.f32 %v839_v57  ;;  %v2510_v49 = vpop.eup %1562  ;;  %v967_v52 = vmul.f32 %v2506_v58, %v2708_v48 }
 0x42c   : > { %1067 = vmatpush.bf16.msra.mxu0 %v1031_v63  ;;  %v1049_v2 = vpack.c.bf16 %v1007_v5, %v1005_v20  ;;  %v1001_v38 = vmul.f32 %v2510_v49, %v2396_v33  ;;  %v1028_v20 = vmul.f32 %v2454_v17, %v2332_v47  ;;  %v1022_v47 = vmul.f32 %v2464_v26, %v2292_v43 }
 0x42e   : > { %1078 = vmatpush.bf16.msra.mxu1 %v1051_v45  ;;  %v2709_v45 = vld [vmem:[#allocation8_spill] sm:$0xff] }
 0x42f   : > { %v1565_v9 = vpop.eup %1564  ;;  %v290_v33 = vpack.c.bf16 %v2709_v45, %v2709_v45 }
 0x430   : > { %v887_v44 = vpop.xlane.xlu1 %886  ;;  %v1003_v56 = vmul.f32 %v1565_v9, %v2418_v36  ;;  %v2710_v36 = vpack.c.bf16 %v2390_v39, %v2386_v40  ;;  %v1024_v40 = vmul.f32 %v2456_v3, %v2298_v15  ;;  %v2712_v39 = vld [vmem:[#allocation9_spill] sm:$0xff]  ;;  %v2714_v15 = vpack.c.bf16 %v2238_v27, %v2230_v19  ;;  %v2718_v27 = vld [vmem:[#allocation32_spill] sm:$0xff] }
 0x431   : > { %v1567_v51 = vpop.eup %1566  ;;  %1568 = vrcp.f32 %v887_v44  ;;  %v2711_v44 = vpack.c.bf16 %v2314_v29, %v2310_v22  ;;  %v1020_v29 = vmul.f32 %v2468_v53, %v2270_v14  ;;  %v2717_v3 = vld [vmem:[#allocation33_spill] sm:$0xff]  ;;  %v972_v19 = vmul.f32 %v2492_v18, %v2392_v30 }
 0x432   : > { %v890_v61 = vpop.xlane.xlu2 %889  ;;  %1079 = vmatpush.bf16.msra.mxu1 %v1049_v2  ;;  %v965_v10 = vmul.f32 %v1567_v51, %v2424_v35  ;;  %v1047_v57 = vpack.c.bf16 %v1003_v56, %v1001_v38  ;;  %v1026_v35 = vmul.f32 %v2460_v13, %v2342_v32  ;;  %v2713_v32 = vpack.c.bf16 %v2284_v41, %v2280_v0  ;;  %v2715_v41 = vld [vmem:[#allocation30_spill] sm:$0xff] }
 0x433   : > { %1570 = vrcp.f32 %v890_v61  ;;  %v1058_v22 = vpack.c.bf16 %v1024_v40, %v1022_v47  ;;  %v1016_v0 = vmul.f32 %v2476_v1, %v2262_v50  ;;  %v2716_v43 = vpack.c.bf16 %v2204_v12, %v2715_v41  ;;  %v2720_v50 = vld [vmem:[#allocation31_spill] sm:$0xff] }
 0x434   : > { %v1029_v63 = vpack.c.bf16 %v967_v52, %v965_v10  ;;  %v1060_v56 = vpack.c.bf16 %v1028_v20, %v1026_v35  ;;  %v1014_v14 = vmul.f32 %v2480_v24, %v2717_v3  ;;  %v1012_v26 = vmul.f32 %v2482_v23, %v2718_v27  ;;  %v2721_v23 = vld [vmem:[#allocation19_spill] sm:$0xff] }
 0x435   : > { %v970_v12 = vmul.f32 %v2486_v34, %v2370_v55  ;;  %v1010_v53 = vmul.f32 %v2488_v25, %v2720_v50  ;;  %v966_v24 = vmul.f32 %v1567_v51, %v2426_v7  ;;  %v1008_v30 = vmul.f32 %v2500_v60, %v2362_v6  ;;  %v1573_v20 = vld [vmem:[%s1794_s26 + $0x8] sm:$0xff] }
 0x436   : > { %1068 = vmatpush.bf16.msra.mxu0 %v1029_v63  ;;  %1080 = vmatpush.bf16.msra.mxu1 %v1047_v57  ;;  %v1054_v13 = vpack.c.bf16 %v1016_v0, %v1014_v14  ;;  %v1004_v34 = vmul.f32 %v1565_v9, %v2422_v21  ;;  %v1002_v7 = vmul.f32 %v2510_v49, %v2402_v37  ;;  %v1113_v21 = vld [vmem:[%s2632_s2] sm:$0xff] }
 0x437   : > { %v1569_v59 = vpop.eup %1568  ;;  %v1052_v1 = vpack.c.bf16 %v1012_v26, %v1010_v53  ;;  %v1114_v37 = vld [vmem:[%s2633_s3] sm:$0xff] }
 0x438   : > { %v997_v5 = vmul.f32 %v1569_v59, %v2432_v11  ;;  %v291_v11 = vpack.c.bf16 %v2712_v39, %v2712_v39  ;;  %v1048_v25 = vpack.c.bf16 %v1004_v34, %v1002_v7  ;;  %v998_v6 = vmul.f32 %v1569_v59, %v2437_v31 }
 0x439   : > { %v1571_v46 = vpop.eup %1570  ;;  %1069 = vmatmul.bf16.vlgmr.msra.gmra.mxu0 %v290_v33  ;;  %v1688_v31 = vmov 0  }
 0x43a   : > { %1087 = vmatpush.bf16.msrb.mxu0 %v2710_v36  ;;  %v999_v2 = vmul.f32 %v1571_v46, %v2439_v8  ;;  %v1018_v8 = vmul.f32 %v2472_v42, %v2256_v28  ;;  %v2719_v28 = vpack.c.bf16 %v2360_v4, %v2354_v16  ;;  %v1032_v42 = vpack.c.bf16 %v972_v19, %v970_v12  ;;  %v2722_v4 = vld [vmem:[#allocation28_spill] sm:$0xff] }
 0x43b   : > { %v968_v16 = vmul.f32 %v2506_v58, %v2721_v23  ;;  %v1006_v18 = vmul.f32 %v2504_v54, %v2722_v4  ;;  %v1000_v60 = vmul.f32 %v1571_v46, %v2445_v62  ;;  %1379 = vset.pattern.permute.xlu0 %v1688_v31  ;;  %v1572_v36 = vld [vmem:[%s1794_s26] sm:$0xff] }
 0x43c   : > { %v1045_v38 = vpack.c.bf16 %v999_v2, %v997_v5  ;;  %v1056_v17 = vpack.c.bf16 %v1020_v29, %v1018_v8  ;;  %1117 = vperm.xlu0 %1379, %v1114_v37  }
 0x43d   : > { %v1030_v61 = vpack.c.bf16 %v968_v16, %v966_v24  ;;  %v1050_v55 = vpack.c.bf16 %v1008_v30, %v1006_v18  ;;  %v1046_v58 = vpack.c.bf16 %v1000_v60, %v998_v6 }
 0x43e   : > { %1088 = vmatpush.bf16.msrb.mxu0 %v2711_v44  ;;  %1081 = vmatpush.bf16.msra.mxu1 %v1045_v38 }
 0x441   : > { %1082 = vmatmul.bf16.vlgmr.msra.gmra.mxu1 %v291_v11 }
 0x442   : > { %1089 = vmatpush.bf16.msrb.mxu0 %v2713_v32  ;;  %1100 = vmatpush.bf16.msrb.mxu1 %v1060_v56 }
 0x446   : > { %1090 = vmatpush.bf16.msrb.mxu0 %v2714_v15  ;;  %1101 = vmatpush.bf16.msrb.mxu1 %v1058_v22 }
 0x44a   : > { %1091 = vmatpush.bf16.msrb.mxu0 %v2716_v43  ;;  %1102 = vmatpush.bf16.msrb.mxu1 %v1056_v17 }
 0x44e   : > { %1092 = vmatpush.bf16.msrb.mxu0 %v2719_v28  ;;  %1103 = vmatpush.bf16.msrb.mxu1 %v1054_v13 }
 0x452   : > { %1093 = vmatpush.bf16.msrb.mxu0 %v1032_v42  ;;  %1104 = vmatpush.bf16.msrb.mxu1 %v1052_v1 }
 0x456   : > { %1094 = vmatpush.bf16.msrb.mxu0 %v1030_v61  ;;  %1105 = vmatpush.bf16.msrb.mxu1 %v1050_v55 }
 0x459   : > { %1095 = vmatmul.bf16.vlgmr.msrb.gmra.mxu0 %v290_v33 }
 0x45a   : > { %1106 = vmatpush.bf16.msrb.mxu1 %v1048_v25 }
 0x45e   : > { %1107 = vmatpush.bf16.msrb.mxu1 %v1046_v58 }
 0x461   : > { %1108 = vmatmul.bf16.vlgmr.msrb.gmra.mxu1 %v291_v11 }
 0x4ae   : > { %v1118_v59 = vpop.permute.xlu0 %1117 }
 0x4b6   : > { %v1070_v54 = vpop.f32.mrf.mxu0 }
 0x4be   : > { %v1072_v51 = vpop.f32.mrf.mxu0  ;;  %v1083_v10 = vpop.f32.mrf.mxu1 }
 0x4bf   : > { %v1084_v48 = vadd.f32 %v1083_v10, %v1070_v54 }
 0x4c1   : > { %1138 = vmatpush.msra.mxu0 %v1084_v48 }
 0x4c2   : > { %1305 = vmatmul.msk.f32.vlgmr.msra.gmra.mxu0 %vm235_vm0, %v1113_v21 }
 0x4c6   : > { %v1085_v62 = vpop.f32.mrf.mxu1 }
 0x4d6   : > { %v1096_v49 = vpop.f32.mrf.mxu0 }
 0x4de   : > { %v1098_v9 = vpop.f32.mrf.mxu0  ;;  %v1109_v52 = vpop.f32.mrf.mxu1 }
 0x4df   : > { %v1110_v57 = vadd.f32 %v1109_v52, %v1096_v49 }
 0x4e1   : > { %1158 = vmatpush.msra.mxu1 %v1110_v57 }
 0x4e2   : > { %1306 = vmatmul.msk.f32.vlgmr.msra.gmra.mxu1 %vm235_vm0, %v1113_v21 }
 0x4e6   : > { %v1111_v63 = vpop.f32.mrf.mxu1 }
 0x53f   : > { %v1140_v45 = vpop.f32.mrf.mxu0 }
 0x540   : > { %v1141_v33 = vadd.f32 %v1140_v45, %v1118_v59 }
 0x542   : > { %v1163_v5 = vadd.f32 %v1572_v36, %v1141_v33 }
 0x544   : > { %1165 = vst [vmem:[%s227_s11] sm:$0xff] %v1163_v5 }
 0x55f   : > { %v1160_v46 = vpop.f32.mrf.mxu1 }
 0x560   : > { %v1161_v35 = vadd.f32 %v1160_v46, %v1118_v59 }
 0x562   : > { %v1164_v2 = vadd.f32 %v1573_v20, %v1161_v35 }
 0x564   : > { %1166 = vst [vmem:[%s227_s11 + $0x8] sm:$0xff] %v1164_v2 }
 0x565   : > { %1631 = shalt.err (!%p1628_p13)
}
 0x566   : > { %1318 = dma.vmem_to_hbm [thread:$0]  (%p1765_p9), %s1182_s25, 256, %s1184_s5, %s1168_s6  }
 0x567 PF: > { %s1195_s21 = sand.u32 1, %s1666_s15   ;;  %p1325_p0 = pnand %p1262_p12, %p1772_p11 }
 0x568   : > { %s1196_s26 = scalar_lea.sflag [#allocation4], %s1195_s21 }
 0x569   : > { %p1326_p1 = pneg %p1325_p0 }
 0x56b   : > { %1661 = dma.done.wait (%p1326_p1), %s1196_s26, 256  }
 0x56c   : > { %1663 = vsyncadd (%p1326_p1), %s1196_s26, 4294967040  ;;  %s20_s20 = sadd.s32 1, %s1686_s20   ;;  %s2723_s15 = smov %s1670_s16 }
 0x56d   : > { %p17_p2 = scmp.ge.s32.totalorder %s20_s20, 4   ;;  %s2724_s16 = smov %s1674_s17 }
 0x56e   : > { %s2725_s17 = smov %s1770_s29  ;;  %s2726_s18 = smov %s1682_s19 }
 0x56f   : > { %s2727_s19 = smov %s2729_s23  ;;  %19 = sbr.rel (!%p17_p2) target bundleno = 6 (0x6), region = 81 }
 0x574   :  { %1202 = vsyncpa [#allocation3], 1 }
 0x575   :  { %1204 = vsyncpa [#allocation3 + $0x1], 1 }
 0x576   :  { %1205 = vsyncpa [#allocation4], 1 }
 0x577   :  { %1207 = vsyncpa [#allocation4 + $0x1], 1 }

</bundles_post_ra>
